<compile_context>
chip_gen: v7x
topology: tpu7x:2x2x1
jax: 0.10.0
libtpu: 0.0.40
codegen_flags: <defaults>
</compile_context>

<pallas_src>
import functools
import itertools

import numpy as np
import jax
import jax.numpy as jnp
from jax import lax
from jax.experimental import pallas as pl
from jax.experimental.pallas import tpu as pltpu


# ----------------------------------------------------------------------------
# __init__-time precompute (host numpy glue, deterministic)
# ----------------------------------------------------------------------------
def compute_partial_repr_np(input_points, control_points):
    diff = input_points[:, None, :] - control_points[None, :, :]
    dist = np.sum(diff * diff, axis=-1)
    with np.errstate(divide="ignore", invalid="ignore"):
        r = 0.5 * dist * np.log(dist)
    return np.where(np.isnan(r), 0.0, r)


def build_target_coordinate_matrix_np(target_height, target_width, tcp):
    HW = target_height * target_width
    coords = np.array(
        list(itertools.product(range(target_height), range(target_width))),
        dtype=np.float64)
    Y = coords[:, 0:1] / (target_height - 1)
    X = coords[:, 1:2] / (target_width - 1)
    target_coordinate = np.concatenate([X, Y], axis=1)
    partial = compute_partial_repr_np(target_coordinate, tcp)
    return np.concatenate(
        [partial, np.ones((HW, 1)), target_coordinate], axis=1)


def build_delta_inverse_np(tcp):
    N = tcp.shape[0]
    fk = np.zeros((N + 3, N + 3), dtype=np.float64)
    fk[:N, :N] = compute_partial_repr_np(tcp, tcp)
    fk[:N, -3] = 1.0
    fk[-3, :N] = 1.0
    fk[:N, -2:] = tcp
    fk[-2:, :N] = tcp.T
    # TODO(synk): torch.pinverse has no in-kernel Pallas equivalent; it is an
    # init-time constant, computed on the host with numpy.
    return np.linalg.pinv(fk, rcond=0.0)


def build_fiducial_control_points(num_cp=8, margin=0.05):
    half = num_cp // 2
    xs = np.linspace(margin, 1.0 - margin, half)
    top = np.stack([xs, np.full(half, margin)], axis=1)
    bot = np.stack([xs, np.full(half, 1.0 - margin)], axis=1)
    return np.concatenate([top, bot], axis=0)


# ----------------------------------------------------------------------------
# Pallas kernel: per-batch TPS mapping + bilinear grid_sample
# ----------------------------------------------------------------------------
def tps_kernel(aT_ref, yT_ref, src_ref, out_ref, coordT_ref,
               *, src_h, src_w, hw, k_chunk):
    # Lane-dense coordinates: coord^T = Y^T @ (repr @ invK)^T  -> (2, HW)
    coordT = jnp.dot(yT_ref[0], aT_ref[...],
                     preferred_element_type=jnp.float32)
    coordT_ref[0] = coordT

    # grid = clamp(coord, 0, 1); 2*grid - 1; grid_sample(align_corners=True)
    # => source pixel position = clamp(coord, 0, 1) * (size - 1)
    cx = jnp.clip(coordT[0:1, :], 0.0, 1.0)            # (1, HW) -> width
    cy = jnp.clip(coordT[1:2, :], 0.0, 1.0)            # (1, HW) -> height
    px = cx * float(src_w - 1)
    py = cy * float(src_h - 1)
    x0f = jnp.floor(px)
    y0f = jnp.floor(py)
    fx = px - x0f
    fy = py - y0f
    x0 = x0f.astype(jnp.int32)
    y0 = y0f.astype(jnp.int32)
    x1 = jnp.minimum(x0 + 1, src_w - 1)   # bilinear weight is 0 when clamped
    y1 = jnp.minimum(y0 + 1, src_h - 1)

    w00 = (1.0 - fx) * (1.0 - fy)
    w01 = fx * (1.0 - fy)
    w10 = (1.0 - fx) * fy
    w11 = fx * fy
    i00 = y0 * src_w + x0
    i01 = y0 * src_w + x1
    i10 = y1 * src_w + x0
    i11 = y1 * src_w + x1

    # bf16 MXU operands, f32 accumulation; elementwise math stays f32/int32.
    src_bf = src_ref[0].astype(jnp.bfloat16)            # (C, Hs*Ws)
    out_ref[...] = jnp.zeros(out_ref.shape, out_ref.dtype)

    # Tile the transposed one-hot bilinear weight matrix (Hs*Ws, HW) over the
    # source-pixel axis; accumulate partial matmuls into the VMEM output block
    # so live vregs stay bounded regardless of problem size.
    k_total = src_h * src_w
    for k0 in range(0, k_total, k_chunk):
        ck = min(k_chunk, k_total - k0)
        q = lax.broadcasted_iota(jnp.int32, (ck, hw), 0) + k0   # src idx, sublanes
        wchunk = (jnp.where(q == i00, w00, 0.0)
                  + jnp.where(q == i01, w01, 0.0)
                  + jnp.where(q == i10, w10, 0.0)
                  + jnp.where(q == i11, w11, 0.0))              # (ck, HW) f32
        delta = jnp.dot(src_bf[:, k0:k0 + ck],
                        wchunk.astype(jnp.bfloat16),
                        preferred_element_type=jnp.float32)     # (C, HW)
        out_ref[0] = out_ref[0] + delta


def _pick_k_chunk(hw, k_total, budget_bytes=128 * 1024):
    """Source-pixel chunk so one f32 (ck, HW) weight chunk stays ~budget."""
    ck = max(1, budget_bytes // (4 * hw))
    if k_total >= 128:
        ck = max(128, (ck // 128) * 128)   # lane-aligned src slice
    else:
        ck = max(8, (ck // 8) * 8)         # sublane-aligned
    return min(k_total, ck)


def tps_spatial_transformer_forward(source, source_control_points,
                                    repr_times_invk_T,
                                    target_height, target_width):
    B, C, Hs, Ws = source.shape
    N = source_control_points.shape[1]
    N3 = N + 3
    HW = target_height * target_width
    K = Hs * Ws

    # Y = [source_control_points ; zeros(B,3,2)] -> lane-dense transpose (B,2,N+3)
    Y = jnp.concatenate(
        [source_control_points,
         jnp.zeros((B, 3, 2), source_control_points.dtype)], axis=1)
    Y_T = jnp.transpose(Y, (0, 2, 1)).astype(jnp.float32)
    src_flat = source.reshape(B, C, K).astype(jnp.float32)

    k_chunk = _pick_k_chunk(HW, K)

    # Generous VMEM cap: double-buffered in/out blocks + weight chunk, with
    # headroom, kept well under v7x's 64 MiB physical VMEM.
    block_bytes = 4 * (N3 * HW + 2 * N3 + C * K + C * HW + 2 * HW)
    vmem_limit = int(min(48 * 1024 * 1024,
                         max(8 * 1024 * 1024,
                             4 * (2 * block_bytes + 2 * k_chunk * HW * 4))))

    kernel = functools.partial(tps_kernel, src_h=Hs, src_w=Ws, hw=HW,
                               k_chunk=k_chunk)

    out_flat, coordT = pl.pallas_call(
        kernel,
        grid=(B,),
        in_specs=[
            pl.BlockSpec((N3, HW), lambda b: (0, 0)),        # A^T (shared)
            pl.BlockSpec((1, 2, N3), lambda b: (b, 0, 0)),   # Y^T per batch
            pl.BlockSpec((1, C, K), lambda b: (b, 0, 0)),    # flattened source
        ],
        out_specs=[
            pl.BlockSpec((1, C, HW), lambda b: (b, 0, 0)),
            pl.BlockSpec((1, 2, HW), lambda b: (b, 0, 0)),   # lane-dense coord
        ],
        out_shape=(
            jax.ShapeDtypeStruct((B, C, HW), jnp.float32),
            jax.ShapeDtypeStruct((B, 2, HW), jnp.float32),
        ),
        compiler_params=pltpu.CompilerParams(
            dimension_semantics=("parallel",),
            vmem_limit_bytes=vmem_limit),
    )(repr_times_invk_T, Y_T, src_flat)

    output_maps = out_flat.reshape(B, C, target_height, target_width)
    source_coordinate = jnp.transpose(coordT, (0, 2, 1))     # (B, HW, 2)
    return output_maps, source_coordinate


# ----------------------------------------------------------------------------
# Pure-JAX reference (faithful to the torch ops, gather-based) for checking
# ----------------------------------------------------------------------------
def reference_forward(source, scp, invk, repr_m, Ht, Wt):
    B, C, Hs, Ws = source.shape
    Y = jnp.concatenate([scp, jnp.zeros((B, 3, 2), jnp.float32)], axis=1)
    mapping = jnp.einsum("ij,bjk->bik", invk, Y)
    coord = jnp.einsum("pi,bik->bpk", repr_m, mapping)        # (B, HW, 2)
    g = jnp.clip(coord, 0.0, 1.0)
    px = g[..., 0] * (Ws - 1)
    py = g[..., 1] * (Hs - 1)
    x0 = jnp.floor(px).astype(jnp.int32)
    y0 = jnp.floor(py).astype(jnp.int32)
    fx = px - x0
    fy = py - y0
    x1 = jnp.minimum(x0 + 1, Ws - 1)
    y1 = jnp.minimum(y0 + 1, Hs - 1)
    srcf = source.reshape(B, C, Hs * Ws)

    def gather(idx):  # idx (B, HW) -> (B, C, HW)
        return jax.vmap(lambda s, i: s[:, i])(srcf, idx)

    v00 = gather(y0 * Ws + x0)
    v01 = gather(y0 * Ws + x1)
    v10 = gather(y1 * Ws + x0)
    v11 = gather(y1 * Ws + x1)
    w00 = ((1 - fx) * (1 - fy))[:, None]
    w01 = (fx * (1 - fy))[:, None]
    w10 = ((1 - fx) * fy)[:, None]
    w11 = (fx * fy)[:, None]
    out = w00 * v00 + w01 * v01 + w10 * v10 + w11 * v11
    return out.reshape(B, C, Ht, Wt), coord


# ----------------------------------------------------------------------------
if __name__ == "__main__":
    # Module config (small, deterministic)
    target_height, target_width = 16, 16
    num_control_points = 8
    B, C, Hs, Ws = 2, 4, 16, 16

    tcp_np = build_fiducial_control_points(num_control_points)      # (N, 2)
    inverse_kernel_np = build_delta_inverse_np(tcp_np)               # (N+3, N+3)
    target_repr_np = build_target_coordinate_matrix_np(
        target_height, target_width, tcp_np)                        # (HW, N+3)
    # Fold repr @ invK once (float64) -> transposed lane-dense constant (N+3, HW)
    A_T_np = (target_repr_np @ inverse_kernel_np).T

    inverse_kernel = jnp.asarray(inverse_kernel_np, dtype=jnp.float32)
    target_coordinate_repr = jnp.asarray(target_repr_np, dtype=jnp.float32)
    repr_times_invk_T = jnp.asarray(A_T_np, dtype=jnp.float32)

    key = jax.random.PRNGKey(0)
    k_src, k_cp = jax.random.split(key)
    source = jax.random.normal(k_src, (B, C, Hs, Ws), dtype=jnp.float32)
    # source control points = target control points + small perturbation
    scp = (jnp.asarray(tcp_np, dtype=jnp.float32)[None]
           + 0.08 * (jax.random.uniform(k_cp, (B, num_control_points, 2),
                                        dtype=jnp.float32) - 0.5))

    out_maps, source_coordinate = tps_spatial_transformer_forward(
        source, scp, repr_times_invk_T, target_height, target_width)
    out_maps = jax.block_until_ready(out_maps)
    source_coordinate = jax.block_until_ready(source_coordinate)

    ref_maps, ref_coord = reference_forward(
        source, scp, inverse_kernel, target_coordinate_repr,
        target_height, target_width)
    ref_maps = jax.block_until_ready(ref_maps)

    # Tolerances: MXU default-precision f32 coord matmul + bf16 sampling
    # operands (f32 accumulation) vs exact elementwise f32 reference; semantic
    # errors would be orders of magnitude larger.
    np.testing.assert_allclose(np.asarray(source_coordinate),
                               np.asarray(ref_coord), atol=1e-2, rtol=1e-2)
    np.testing.assert_allclose(np.asarray(out_maps),
                               np.asarray(ref_maps), atol=7.5e-2, rtol=5e-2)

    print("KERNEL_OK")
</pallas_src>

<mosaic_0001>
module attributes {stable_mosaic.version = 11 : i64} {
  func.func @tps_kernel(%arg0: i32, %arg1: memref<11x256xf32, #tpu.memory_space<vmem>>, %arg2: memref<1x2x11xf32, #tpu.memory_space<vmem>>, %arg3: memref<1x4x256xf32, #tpu.memory_space<vmem>>, %arg4: memref<1x4x256xf32, #tpu.memory_space<vmem>>, %arg5: memref<1x2x256xf32, #tpu.memory_space<vmem>>) attributes {dimension_semantics = [#tpu.dimension_semantics<parallel>], iteration_bounds = array<i64: 2>, scalar_prefetch = 0 : i64, scratch_operands = 0 : i64, tpu.core_type = #tpu.core_type<tc>, window_params = [{pipeline_mode = #tpu.pipeline_mode<synchronous>, transform_indices = @transform_0, window_bounds = array<i64: 11, 256>}, {transform_indices = @transform_1, window_bounds = array<i64: 1, 2, 11>}, {transform_indices = @transform_2, window_bounds = array<i64: 1, 4, 256>}, {transform_indices = @transform_3, window_bounds = array<i64: 1, 4, 256>}, {transform_indices = @transform_4, window_bounds = array<i64: 1, 2, 256>}]} {
    %c0 = arith.constant 0 : index
    %c0_0 = arith.constant 0 : index
    %c0_1 = arith.constant 0 : index
    %0 = vector.load %arg2[%c0, %c0_0, %c0_1] : memref<1x2x11xf32, #tpu.memory_space<vmem>>, vector<1x2x11xf32>
    %1 = vector.shape_cast %0 : vector<1x2x11xf32> to vector<2x11xf32>
    %c0_2 = arith.constant 0 : index
    %c0_3 = arith.constant 0 : index
    %2 = vector.load %arg1[%c0_2, %c0_3] : memref<11x256xf32, #tpu.memory_space<vmem>>, vector<11x256xf32>
    %cst = arith.constant dense<0.000000e+00> : vector<2x256xf32>
    %3 = tpu.matmul %1, %2, %cst {dimension_numbers = #tpu.dot_dimension_numbers<[1], [0], [0], [1], [0, 0, 1, 1], [], []>} : vector<2x11xf32>, vector<11x256xf32>, vector<2x256xf32> -> vector<2x256xf32>
    %c0_4 = arith.constant 0 : index
    %c0_5 = arith.constant 0 : index
    %c0_6 = arith.constant 0 : index
    %4 = vector.load %arg5[%c0_4, %c0_5, %c0_6] : memref<1x2x256xf32, #tpu.memory_space<vmem>>, vector<1x2x256xf32>
    %5 = vector.shape_cast %4 : vector<1x2x256xf32> to vector<2x256xf32>
    %6 = vector.shape_cast %3 : vector<2x256xf32> to vector<1x2x256xf32>
    tpu.vector_store %arg5[%c0_4, %c0_5, %c0_6], %6 {strides = array<i32>} : memref<1x2x256xf32, #tpu.memory_space<vmem>>, vector<1x2x256xf32>,
    %7 = vector.extract_strided_slice %3 {offsets = [0, 0], sizes = [1, 256], strides = [1, 1]} : vector<2x256xf32> to vector<1x256xf32>
    %cst_7 = arith.constant 0.000000e+00 : f32
    %cst_8 = arith.constant 1.000000e+00 : f32
    %8 = vector.broadcast %cst_7 : f32 to vector<1x256xf32>
    %9 = arith.maximumf %8, %7 : vector<1x256xf32>
    %10 = vector.broadcast %cst_8 : f32 to vector<1x256xf32>
    %11 = arith.minimumf %10, %9 : vector<1x256xf32>
    %12 = vector.extract_strided_slice %3 {offsets = [1, 0], sizes = [1, 256], strides = [1, 1]} : vector<2x256xf32> to vector<1x256xf32>
    %cst_9 = arith.constant 0.000000e+00 : f32
    %cst_10 = arith.constant 1.000000e+00 : f32
    %13 = vector.broadcast %cst_9 : f32 to vector<1x256xf32>
    %14 = arith.maximumf %13, %12 : vector<1x256xf32>
    %15 = vector.broadcast %cst_10 : f32 to vector<1x256xf32>
    %16 = arith.minimumf %15, %14 : vector<1x256xf32>
    %cst_11 = arith.constant 1.500000e+01 : f32
    %17 = vector.broadcast %cst_11 : f32 to vector<1x256xf32>
    %18 = arith.mulf %11, %17 : vector<1x256xf32>
    %cst_12 = arith.constant 1.500000e+01 : f32
    %19 = vector.broadcast %cst_12 : f32 to vector<1x256xf32>
    %20 = arith.mulf %16, %19 : vector<1x256xf32>
    %21 = math.floor %18 : vector<1x256xf32>
    %22 = math.floor %20 : vector<1x256xf32>
    %23 = arith.subf %18, %21 : vector<1x256xf32>
    %24 = arith.subf %20, %22 : vector<1x256xf32>
    %25 = arith.fptosi %21 : vector<1x256xf32> to vector<1x256xi32>
    %26 = arith.fptosi %22 : vector<1x256xf32> to vector<1x256xi32>
    %c1_i32 = arith.constant 1 : i32
    %27 = vector.broadcast %c1_i32 : i32 to vector<1x256xi32>
    %28 = arith.addi %25, %27 : vector<1x256xi32>
    %c15_i32 = arith.constant 15 : i32
    %29 = vector.broadcast %c15_i32 : i32 to vector<1x256xi32>
    %30 = arith.minsi %28, %29 : vector<1x256xi32>
    %c1_i32_13 = arith.constant 1 : i32
    %31 = vector.broadcast %c1_i32_13 : i32 to vector<1x256xi32>
    %32 = arith.addi %26, %31 : vector<1x256xi32>
    %c15_i32_14 = arith.constant 15 : i32
    %33 = vector.broadcast %c15_i32_14 : i32 to vector<1x256xi32>
    %34 = arith.minsi %32, %33 : vector<1x256xi32>
    %cst_15 = arith.constant 1.000000e+00 : f32
    %35 = vector.broadcast %cst_15 : f32 to vector<1x256xf32>
    %36 = arith.subf %35, %23 : vector<1x256xf32>
    %cst_16 = arith.constant 1.000000e+00 : f32
    %37 = vector.broadcast %cst_16 : f32 to vector<1x256xf32>
    %38 = arith.subf %37, %24 : vector<1x256xf32>
    %39 = arith.mulf %36, %38 : vector<1x256xf32>
    %cst_17 = arith.constant 1.000000e+00 : f32
    %40 = vector.broadcast %cst_17 : f32 to vector<1x256xf32>
    %41 = arith.subf %40, %24 : vector<1x256xf32>
    %42 = arith.mulf %23, %41 : vector<1x256xf32>
    %cst_18 = arith.constant 1.000000e+00 : f32
    %43 = vector.broadcast %cst_18 : f32 to vector<1x256xf32>
    %44 = arith.subf %43, %23 : vector<1x256xf32>
    %45 = arith.mulf %44, %24 : vector<1x256xf32>
    %46 = arith.mulf %23, %24 : vector<1x256xf32>
    %c16_i32 = arith.constant 16 : i32
    %47 = vector.broadcast %c16_i32 : i32 to vector<1x256xi32>
    %48 = arith.muli %26, %47 : vector<1x256xi32>
    %49 = arith.addi %48, %25 : vector<1x256xi32>
    %c16_i32_19 = arith.constant 16 : i32
    %50 = vector.broadcast %c16_i32_19 : i32 to vector<1x256xi32>
    %51 = arith.muli %26, %50 : vector<1x256xi32>
    %52 = arith.addi %51, %30 : vector<1x256xi32>
    %c16_i32_20 = arith.constant 16 : i32
    %53 = vector.broadcast %c16_i32_20 : i32 to vector<1x256xi32>
    %54 = arith.muli %34, %53 : vector<1x256xi32>
    %55 = arith.addi %54, %25 : vector<1x256xi32>
    %c16_i32_21 = arith.constant 16 : i32
    %56 = vector.broadcast %c16_i32_21 : i32 to vector<1x256xi32>
    %57 = arith.muli %34, %56 : vector<1x256xi32>
    %58 = arith.addi %57, %30 : vector<1x256xi32>
    %c0_22 = arith.constant 0 : index
    %c0_23 = arith.constant 0 : index
    %c0_24 = arith.constant 0 : index
    %59 = vector.load %arg3[%c0_22, %c0_23, %c0_24] : memref<1x4x256xf32, #tpu.memory_space<vmem>>, vector<1x4x256xf32>
    %60 = vector.shape_cast %59 : vector<1x4x256xf32> to vector<4x256xf32>
    %61 = arith.truncf %60 : vector<4x256xf32> to vector<4x256xbf16>
    %cst_25 = arith.constant 0.000000e+00 : f32
    %62 = vector.broadcast %cst_25 : f32 to vector<1x4x256xf32>
    %c0_26 = arith.constant 0 : index
    %c0_27 = arith.constant 0 : index
    %c0_28 = arith.constant 0 : index
    %63 = vector.load %arg4[%c0_26, %c0_27, %c0_28] : memref<1x4x256xf32, #tpu.memory_space<vmem>>, vector<1x4x256xf32>
    tpu.vector_store %arg4[%c0_26, %c0_27, %c0_28], %62 {strides = array<i32>} : memref<1x4x256xf32, #tpu.memory_space<vmem>>, vector<1x4x256xf32>,
    %64 = tpu.iota {dimensions = array<i32: 0>} : vector<128x256xi32>
    %c0_i32 = arith.constant 0 : i32
    %65 = vector.broadcast %c0_i32 : i32 to vector<128x256xi32>
    %66 = arith.addi %64, %65 : vector<128x256xi32>
    %67 = vector.broadcast %49 : vector<1x256xi32> to vector<128x256xi32>
    %68 = arith.cmpi eq, %66, %67 : vector<128x256xi32>
    %cst_29 = arith.constant 0.000000e+00 : f32
    %69 = vector.shape_cast %39 : vector<1x256xf32> to vector<1x256xf32>
    %70 = vector.broadcast %69 : vector<1x256xf32> to vector<128x256xf32>
    %71 = vector.broadcast %cst_29 : f32 to vector<128x256xf32>
    %72 = arith.select %68, %70, %71 : vector<128x256xi1>, vector<128x256xf32>
    %73 = vector.broadcast %52 : vector<1x256xi32> to vector<128x256xi32>
    %74 = arith.cmpi eq, %66, %73 : vector<128x256xi32>
    %cst_30 = arith.constant 0.000000e+00 : f32
    %75 = vector.shape_cast %42 : vector<1x256xf32> to vector<1x256xf32>
    %76 = vector.broadcast %75 : vector<1x256xf32> to vector<128x256xf32>
    %77 = vector.broadcast %cst_30 : f32 to vector<128x256xf32>
    %78 = arith.select %74, %76, %77 : vector<128x256xi1>, vector<128x256xf32>
    %79 = arith.addf %72, %78 : vector<128x256xf32>
    %80 = vector.broadcast %55 : vector<1x256xi32> to vector<128x256xi32>
    %81 = arith.cmpi eq, %66, %80 : vector<128x256xi32>
    %cst_31 = arith.constant 0.000000e+00 : f32
    %82 = vector.shape_cast %45 : vector<1x256xf32> to vector<1x256xf32>
    %83 = vector.broadcast %82 : vector<1x256xf32> to vector<128x256xf32>
    %84 = vector.broadcast %cst_31 : f32 to vector<128x256xf32>
    %85 = arith.select %81, %83, %84 : vector<128x256xi1>, vector<128x256xf32>
    %86 = arith.addf %79, %85 : vector<128x256xf32>
    %87 = vector.broadcast %58 : vector<1x256xi32> to vector<128x256xi32>
    %88 = arith.cmpi eq, %66, %87 : vector<128x256xi32>
    %cst_32 = arith.constant 0.000000e+00 : f32
    %89 = vector.shape_cast %46 : vector<1x256xf32> to vector<1x256xf32>
    %90 = vector.broadcast %89 : vector<1x256xf32> to vector<128x256xf32>
    %91 = vector.broadcast %cst_32 : f32 to vector<128x256xf32>
    %92 = arith.select %88, %90, %91 : vector<128x256xi1>, vector<128x256xf32>
    %93 = arith.addf %86, %92 : vector<128x256xf32>
    %94 = vector.extract_strided_slice %61 {offsets = [0, 0], sizes = [4, 128], strides = [1, 1]} : vector<4x256xbf16> to vector<4x128xbf16>
    %95 = arith.truncf %93 : vector<128x256xf32> to vector<128x256xbf16>
    %cst_33 = arith.constant dense<0.000000e+00> : vector<4x256xf32>
    %96 = tpu.matmul %94, %95, %cst_33 {dimension_numbers = #tpu.dot_dimension_numbers<[1], [0], [0], [1], [0, 0, 1, 1], [], []>} : vector<4x128xbf16>, vector<128x256xbf16>, vector<4x256xf32> -> vector<4x256xf32>
    %c0_34 = arith.constant 0 : index
    %c0_35 = arith.constant 0 : index
    %c0_36 = arith.constant 0 : index
    %97 = vector.load %arg4[%c0_34, %c0_35, %c0_36] : memref<1x4x256xf32, #tpu.memory_space<vmem>>, vector<1x4x256xf32>
    %98 = vector.shape_cast %97 : vector<1x4x256xf32> to vector<4x256xf32>
    %99 = arith.addf %98, %96 : vector<4x256xf32>
    %c0_37 = arith.constant 0 : index
    %c0_38 = arith.constant 0 : index
    %c0_39 = arith.constant 0 : index
    %100 = vector.load %arg4[%c0_37, %c0_38, %c0_39] : memref<1x4x256xf32, #tpu.memory_space<vmem>>, vector<1x4x256xf32>
    %101 = vector.shape_cast %100 : vector<1x4x256xf32> to vector<4x256xf32>
    %102 = vector.shape_cast %99 : vector<4x256xf32> to vector<1x4x256xf32>
    tpu.vector_store %arg4[%c0_37, %c0_38, %c0_39], %102 {strides = array<i32>} : memref<1x4x256xf32, #tpu.memory_space<vmem>>, vector<1x4x256xf32>,
    %103 = tpu.iota {dimensions = array<i32: 0>} : vector<128x256xi32>
    %c128_i32 = arith.constant 128 : i32
    %104 = vector.broadcast %c128_i32 : i32 to vector<128x256xi32>
    %105 = arith.addi %103, %104 : vector<128x256xi32>
    %106 = vector.broadcast %49 : vector<1x256xi32> to vector<128x256xi32>
    %107 = arith.cmpi eq, %105, %106 : vector<128x256xi32>
    %cst_40 = arith.constant 0.000000e+00 : f32
    %108 = vector.shape_cast %39 : vector<1x256xf32> to vector<1x256xf32>
    %109 = vector.broadcast %108 : vector<1x256xf32> to vector<128x256xf32>
    %110 = vector.broadcast %cst_40 : f32 to vector<128x256xf32>
    %111 = arith.select %107, %109, %110 : vector<128x256xi1>, vector<128x256xf32>
    %112 = vector.broadcast %52 : vector<1x256xi32> to vector<128x256xi32>
    %113 = arith.cmpi eq, %105, %112 : vector<128x256xi32>
    %cst_41 = arith.constant 0.000000e+00 : f32
    %114 = vector.shape_cast %42 : vector<1x256xf32> to vector<1x256xf32>
    %115 = vector.broadcast %114 : vector<1x256xf32> to vector<128x256xf32>
    %116 = vector.broadcast %cst_41 : f32 to vector<128x256xf32>
    %117 = arith.select %113, %115, %116 : vector<128x256xi1>, vector<128x256xf32>
    %118 = arith.addf %111, %117 : vector<128x256xf32>
    %119 = vector.broadcast %55 : vector<1x256xi32> to vector<128x256xi32>
    %120 = arith.cmpi eq, %105, %119 : vector<128x256xi32>
    %cst_42 = arith.constant 0.000000e+00 : f32
    %121 = vector.shape_cast %45 : vector<1x256xf32> to vector<1x256xf32>
    %122 = vector.broadcast %121 : vector<1x256xf32> to vector<128x256xf32>
    %123 = vector.broadcast %cst_42 : f32 to vector<128x256xf32>
    %124 = arith.select %120, %122, %123 : vector<128x256xi1>, vector<128x256xf32>
    %125 = arith.addf %118, %124 : vector<128x256xf32>
    %126 = vector.broadcast %58 : vector<1x256xi32> to vector<128x256xi32>
    %127 = arith.cmpi eq, %105, %126 : vector<128x256xi32>
    %cst_43 = arith.constant 0.000000e+00 : f32
    %128 = vector.shape_cast %46 : vector<1x256xf32> to vector<1x256xf32>
    %129 = vector.broadcast %128 : vector<1x256xf32> to vector<128x256xf32>
    %130 = vector.broadcast %cst_43 : f32 to vector<128x256xf32>
    %131 = arith.select %127, %129, %130 : vector<128x256xi1>, vector<128x256xf32>
    %132 = arith.addf %125, %131 : vector<128x256xf32>
    %133 = vector.extract_strided_slice %61 {offsets = [0, 128], sizes = [4, 128], strides = [1, 1]} : vector<4x256xbf16> to vector<4x128xbf16>
    %134 = arith.truncf %132 : vector<128x256xf32> to vector<128x256xbf16>
    %cst_44 = arith.constant dense<0.000000e+00> : vector<4x256xf32>
    %135 = tpu.matmul %133, %134, %cst_44 {dimension_numbers = #tpu.dot_dimension_numbers<[1], [0], [0], [1], [0, 0, 1, 1], [], []>} : vector<4x128xbf16>, vector<128x256xbf16>, vector<4x256xf32> -> vector<4x256xf32>
    %c0_45 = arith.constant 0 : index
    %c0_46 = arith.constant 0 : index
    %c0_47 = arith.constant 0 : index
    %136 = vector.load %arg4[%c0_45, %c0_46, %c0_47] : memref<1x4x256xf32, #tpu.memory_space<vmem>>, vector<1x4x256xf32>
    %137 = vector.shape_cast %136 : vector<1x4x256xf32> to vector<4x256xf32>
    %138 = arith.addf %137, %135 : vector<4x256xf32>
    %c0_48 = arith.constant 0 : index
    %c0_49 = arith.constant 0 : index
    %c0_50 = arith.constant 0 : index
    %139 = vector.load %arg4[%c0_48, %c0_49, %c0_50] : memref<1x4x256xf32, #tpu.memory_space<vmem>>, vector<1x4x256xf32>
    %140 = vector.shape_cast %139 : vector<1x4x256xf32> to vector<4x256xf32>
    %141 = vector.shape_cast %138 : vector<4x256xf32> to vector<1x4x256xf32>
    tpu.vector_store %arg4[%c0_48, %c0_49, %c0_50], %141 {strides = array<i32>} : memref<1x4x256xf32, #tpu.memory_space<vmem>>, vector<1x4x256xf32>,
    return
  }
  func.func @transform_0(%arg0: i32) -> (i32, i32) {
    %c0_i32 = arith.constant 0 : i32
    %c0_i32_0 = arith.constant 0 : i32
    %c0_i32_1 = arith.constant 0 : i32
    return %c0_i32, %c0_i32_0 : i32, i32
  }
  func.func @transform_1(%arg0: i32) -> (i32, i32, i32) {
    %c0_i32 = arith.constant 0 : i32
    %c0_i32_0 = arith.constant 0 : i32
    %c0_i32_1 = arith.constant 0 : i32
    return %arg0, %c0_i32, %c0_i32_0 : i32, i32, i32
  }
  func.func @transform_2(%arg0: i32) -> (i32, i32, i32) {
    %c0_i32 = arith.constant 0 : i32
    %c0_i32_0 = arith.constant 0 : i32
    %c0_i32_1 = arith.constant 0 : i32
    return %arg0, %c0_i32, %c0_i32_0 : i32, i32, i32
  }
  func.func @transform_3(%arg0: i32) -> (i32, i32, i32) {
    %c0_i32 = arith.constant 0 : i32
    %c0_i32_0 = arith.constant 0 : i32
    %c0_i32_1 = arith.constant 0 : i32
    return %arg0, %c0_i32, %c0_i32_0 : i32, i32, i32
  }
  func.func @transform_4(%arg0: i32) -> (i32, i32, i32) {
    %c0_i32 = arith.constant 0 : i32
    %c0_i32_0 = arith.constant 0 : i32
    %c0_i32_1 = arith.constant 0 : i32
    return %arg0, %c0_i32, %c0_i32_0 : i32, i32, i32
  }
}

</mosaic_0001>

<bundles_post_ra>
// kernel: tpu_custom_call.1
= control target key start
LH: loop header
LB: loop body
LE: loop exit
PB: predicated region body
PF: predicated region fallthrough
CT: control target
= control target key end

     0   :  { %s3075_s0 = inlined_call_operand.hbm [shape: f32[11,256], index: 0, kind: input, shape index: {}]   ;;  %s3076_s1 = inlined_call_operand.hbm [shape: f32[2,2,11], index: 1, kind: input, shape index: {}]   ;;  %s3077_s2 = inlined_call_operand.hbm [shape: f32[2,4,256], index: 2, kind: input, shape index: {}]   ;;  %s3078_s3 = inlined_call_operand.hbm [shape: f32[2,4,256], index: 3, kind: output, shape index: {0}]   ;;  %s3079_s4 = inlined_call_operand.hbm [shape: f32[2,2,256], index: 4, kind: output, shape index: {1}]  }
   0x1   :  { %3087 = sst [smem:[#allocation15_spill]] %s3076_s1 }
   0x2   :  { %10 = vsyncpa [#allocation3], 0 }
   0x3   :  { %11 = vsyncpa [#allocation6], 0 }
   0x4   :  { %13 = vsyncpa [#allocation6 + $0x1], 0 }
   0x5   :  { %14 = vsyncpa [#allocation4], 0 }
   0x6   :  { %16 = vsyncpa [#allocation4 + $0x1], 0 }
   0x7   :  { %17 = vsyncpa [#allocation10], 0 }
   0x8   :  { %19 = vsyncpa [#allocation10 + $0x1], 0  ;;  %s1874_s15 = smov 0   ;;  %s1876_s16 = smov 0  }
   0x9   :  { %s1878_s17 = smov 0   ;;  %s1880_s18 = smov 0  }
   0xa LB: > { %s1895_s19 = sadd.s32 1, %s1837_s18   ;;  %s53_s20 = sadd.s32 1, %s1833_s17  ;;  %s1837_s18 = sphi %s1880_s18, %s3108_s18   ;;  %s1833_s17 = sphi %s1878_s17, %s3107_s17   ;;  %s1829_s16 = sphi %s1876_s16, %s3106_s16   ;;  %s1825_s15 = sphi %s1874_s15, %s3105_s15  }
   0xb   : > { %s50_s21 = ssub.s32 %s1837_s18, %s1895_s19  ;;  %p60_p0 = scmp.ne.s32.totalorder %s1833_s17, %s1829_s16 }
   0xc   : > { %p51_p1 = scmp.eq.s32.totalorder %s50_s21, 0  ;;  %p61_p2 = scmp.eq.s32.totalorder %s1837_s18, 0 }
   0xd   : > { %p1605_p4 = scmp.lt.s32.totalorder %s1837_s18, 2  ;;  %s181_s23 = sand.u32 1, %s1837_s18  }
   0xe   : > { %s1906_s22 = scalar_select %p51_p1, %s1833_s17, %s53_s20  }
   0xf   : > { %p62_p5 = por %p61_p2, %p60_p0  ;;  %s183_s24 = sand.u32 1, %s1833_s17  }
  0x10   : > { %s1538_s25 = sshll.u32 %s183_s24, 1  ;;  %s1539_s26 = sshll.u32 %s1837_s18, 5 }
  0x11   : > { %s3088_s1 = sld [smem:[#allocation15_spill]]  ;;  %s185_s30 = scalar_lea.vmem [#allocation5], %s1538_s25 }
  0x12   : > { %s192_s5 = sshll.u32 %s185_s30, 4  ;;  %p1919_p6 = pnand %p1605_p4, %p62_p5  ;;  %s1923_s5 = int_to_ptr.vmem [resolvable:$true] %s192_s5 }
  0x13   : > { %s1925_s7 = sshll.u32 %s183_s24, 3  ;;  %s1927_s8 = scalar_lea.sflag [#allocation6], %s181_s23 }
  0x14   : > { %s3089_s6 = scalar_select %p1919_p6, 1, 0 }
  0x15   : > { %p3081_p8 = pneg %p1919_p6 }
  0x17   : > { %s1917_s29 = scalar_lea.hbm %s3088_s1, %s1539_s26  ;;  %s1652_s12 = scalar_lea.hbm %s3088_s1, 64 }
  0x18   : > { %s1647_s9 = scalar_lea.hbm %s1917_s29, 32  ;;  %p1653_p11 = scmp.lt.u32.totalorder %s1917_s29, %s3088_s1 }
  0x19   : > { %p1648_p7 = scmp.ne.s32.totalorder %s1917_s29, %s1647_s9  ;;  %p1654_p12 = scmp.lt.u32.totalorder %s1652_s12, %s1647_s9 }
  0x1a   : > { %p1656_p1 = scmp.lt.u32.totalorder %s1647_s9, %s1917_s29 }
  0x1b   : > { %p1650_p9 = pnand %p3081_p8, %p1648_p7  ;;  %p1655_p13 = por %p1654_p12, %p1653_p11 }
  0x1d   : > { %p1651_p10 = pneg %p1650_p9  ;;  %p1657_p2 = por %p1656_p1, %p1655_p13 }
  0x1f   : > { %p1658_p4 = pnand %p1657_p2, %p1651_p10 }
  0x21   : > { %1661 = shalt.err (!%p1658_p4)
}
  0x22   : > { %s1662_s20 = scalar_lea.vmem %s1923_s5, 32  ;;  %s1839_s21 = smov [#allocation5]  }
  0x23   : > { %p1663_p5 = scmp.ne.s32.totalorder %s1923_s5, %s1662_s20  ;;  %s1667_s23 = sshll.u32 %s1839_s21, 4  ;;  %s1668_s23 = int_to_ptr.vmem [resolvable:$false] %s1667_s23 }
  0x24   : > { %s1669_s24 = scalar_lea.vmem %s1668_s23, 64  ;;  %p1670_p3 = scmp.lt.s32.totalorder %s1923_s5, %s1668_s23 }
  0x25   : > { %p1665_p7 = pnand %p1663_p5, %p3081_p8  ;;  %p1671_p11 = scmp.lt.s32.totalorder %s1669_s24, %s1662_s20 }
  0x27   : > { %p1666_p9 = pneg %p1665_p7  ;;  %p1672_p12 = por %p1671_p11, %p1670_p3 }
  0x29   : > { %p1673_p13 = pnand %p1672_p12, %p1666_p9 }
  0x2b   : > { %1676 = shalt.err (!%p1673_p13)
}
  0x2c   : > { %1593 = dma.hbm_to_vmem [thread:$0]  (!%p1919_p6), %s1917_s29, 32, %s1923_s5, %s1927_s8  }
  0x2d   : > { %s1956_s25 = sadd.s32 4294967295, %s1837_s18   ;;  %s1534_s26 = sadd.s32 4294967294, %s1837_s18  }
  0x2e   : > { %p66_p3 = scmp.ne.s32.totalorder %s1829_s16, %s1825_s15  ;;  %p3080_p10 = scmp.eq.s32.totalorder %s1956_s25, 0 }
  0x2f   : > { %p116_p1 = scmp.eq.s32.totalorder %s1956_s25, 1  ;;  %p122_p2 = scmp.eq.s32.totalorder %s1534_s26, 1 }
  0x30   : > { %p1535_p4 = scmp.ge.s32.totalorder %s1837_s18, 1  ;;  %p1966_p5 = por %p3080_p10, %p66_p3 }
  0x31   : > { %p1973_p7 = por %p116_p1, %p60_p0  ;;  %p1977_p9 = por %p122_p2, %p66_p3 }
  0x32   : > { %s3090_s27 = scalar_select %p1966_p5, 1, 0 }
  0x33   : > { %s3091_s28 = scalar_select %p1973_p7, 1, 0 }
  0x34   : > { %s3092_s29 = scalar_select %p1977_p9, 1, 0 }
  0x35   : > { %p155_p11 = scmp.lt.s32.totalorder %s1837_s18, 3  ;;  %s1840_s5 = smov [#allocation2]  }
  0x36   : > { %s167_s9 = sshll.u32 %s1840_s5, 4  ;;  %s1561_s10 = sshll.u32 %s1837_s18, 7  ;;  %s1986_s9 = int_to_ptr.vmem [resolvable:$true] %s167_s9 }
  0x37   : > { %p1982_p12 = pnand %p1535_p4, %p155_p11  ;;  %s2000_s14 = scalar_lea.hbm %s3077_s2, %s1561_s10 }
  0x38   : > { %s203_s20 = scalar_lea.vmem [#allocation7], %s1925_s7  ;;  %s1677_s26 = scalar_lea.hbm %s3075_s0, 512 }
  0x39   : > { %s3093_s30 = scalar_select %p1982_p12, 1, 0 }
  0x3a   : > { %p1586_p13 = pneg %p1982_p12  ;;  %s211_s21 = sshll.u32 %s203_s20, 4  ;;  %s2003_s21 = int_to_ptr.vmem [resolvable:$true] %s211_s21 }
  0x3b   : > { %p1678_p3 = scmp.ne.s32.totalorder %s3075_s0, %s1677_s26  ;;  %p1684_p11 = scmp.lt.u32.totalorder %s1677_s26, %s3075_s0 }
  0x3c   : > { %p1993_p0 = pnand %p1586_p13, %p3080_p10 }
  0x3e   : > { %p1679_p1 = pneg %p1993_p0 }
  0x40   : > { %p1680_p2 = pnand %p1679_p1, %p1678_p3 }
  0x42   : > { %p1681_p4 = pneg %p1680_p2 }
  0x44   : > { %p1686_p13 = pnand %p1684_p11, %p1681_p4 }
  0x46   : > { %1689 = shalt.err (!%p1686_p13)
}
  0x47   : > { %s1690_s7 = scalar_lea.vmem %s1986_s9, 512  ;;  %p1698_p7 = scmp.lt.s32.totalorder %s1986_s9, %s1986_s9 }
  0x48   : > { %p1691_p10 = scmp.ne.s32.totalorder %s1986_s9, %s1690_s7  ;;  %p1699_p5 = scmp.lt.s32.totalorder %s1690_s7, %s1690_s7 }
  0x4a   : > { %p1693_p8 = pnand %p1691_p10, %p1679_p1  ;;  %p1700_p12 = por %p1699_p5, %p1698_p7 }
  0x4c   : > { %p1694_p9 = pneg %p1693_p8 }
  0x4e   : > { %p1701_p6 = pnand %p1700_p12, %p1694_p9 }
  0x50   : > { %1704 = shalt.err (!%p1701_p6)
}
  0x51   : > { %s1841_s1 = smov 256   ;;  %s1842_s10 = smov 16  }
  0x52   : > { %1589 = dma.hbm_to_vmem [thread:$0]  (!%p1993_p0), %s3075_s0, 512, %s1986_s9, [#allocation3], %s1841_s1, %s1841_s1, %s1842_s10  }
  0x53   : > { %s1705_s24 = scalar_lea.hbm %s2000_s14, 128  ;;  %p3095_p10 = scmp.ne.s32.totalorder %s3089_s6, 0 }
  0x54   : > { %p1706_p8 = scmp.ne.s32.totalorder %s2000_s14, %s1705_s24  ;;  %s1710_s12 = scalar_lea.hbm %s3077_s2, 256 }
  0x55   : > { %p3096_p5 = pneg %p3095_p10  ;;  %p1711_p9 = scmp.lt.u32.totalorder %s2000_s14, %s3077_s2 }
  0x56   : > { %p1712_p12 = scmp.lt.u32.totalorder %s1710_s12, %s1705_s24  ;;  %p1714_p1 = scmp.lt.u32.totalorder %s1705_s24, %s2000_s14 }
  0x57   : > { %p1708_p7 = pnand %p1706_p8, %p3096_p5 }
  0x58   : > { %p1713_p3 = por %p1712_p12, %p1711_p9 }
  0x59   : > { %p1709_p6 = pneg %p1708_p7 }
  0x5a   : > { %p1715_p2 = por %p1714_p1, %p1713_p3 }
  0x5c   : > { %p1716_p4 = pnand %p1715_p2, %p1709_p6 }
  0x5e   : > { %1719 = shalt.err (!%p1716_p4)
}
  0x5f   : > { %s1720_s9 = scalar_lea.vmem %s2003_s21, 128  ;;  %p3097_p11 = pmov %p3096_p5 }
  0x60   : > { %p1721_p0 = scmp.ne.s32.totalorder %s2003_s21, %s1720_s9  ;;  %s1843_s11 = smov [#allocation7]  }
  0x61   : > { %s1725_s1 = sshll.u32 %s1843_s11, 4  ;;  %s1726_s1 = int_to_ptr.vmem [resolvable:$false] %s1725_s1 }
  0x62   : > { %p1723_p13 = pnand %p1721_p0, %p3097_p11  ;;  %s1727_s10 = scalar_lea.vmem %s1726_s1, 256 }
  0x63   : > { %p1728_p5 = scmp.lt.s32.totalorder %s2003_s21, %s1726_s1  ;;  %p1729_p7 = scmp.lt.s32.totalorder %s1727_s10, %s1720_s9 }
  0x64   : > { %p1724_p8 = pneg %p1723_p13 }
  0x65   : > { %p1730_p9 = por %p1729_p7, %p1728_p5 }
  0x67   : > { %p1731_p12 = pnand %p1730_p9, %p1724_p8 }
  0x69   : > { %1734 = shalt.err (!%p1731_p12)
}
  0x6a   : > { %1596 = dma.hbm_to_vmem [thread:$0]  (!%p3095_p10), %s2000_s14, 128, %s2003_s21, %s1927_s8  }
  0x6b   : > { %p3098_p6 = scmp.ne.s32.totalorder %s3093_s30, 0 }
  0x6c   : > { %p3099_p3 = scmp.eq.s32.totalorder (!%p3098_p6), %s1956_s25, 0 }
  0x6d   : > { %220 = sbr.rel (%p3098_p6) target bundleno = 791 (0x317), region = 32 }
  0x74   : > { %1808 = dma.done.wait (%p3099_p3), [#allocation3], 512   ;;  %p3100_p1 = pmov %p3099_p3 }
  0x75   : > { %s226_s20 = sand.u32 1, %s1956_s25   ;;  %s2058_s23 = sand.u32 1, %s1829_s16  }
  0x76   : > { %1810 = vsyncadd (%p3100_p1), [#allocation3], 4294966784  ;;  %s1545_s6 = sshll.u32 %s2058_s23, 1  ;;  %s227_s24 = scalar_lea.sflag [#allocation6], %s226_s20 }
  0x77   : > { %s230_s26 = scalar_lea.vmem [#allocation5], %s1545_s6  ;;  %p3101_p10 = scmp.ne.s32.totalorder %s3090_s27, 0 }
  0x79   : > { %1812 = dma.done.wait (%p3101_p10), %s227_s24, 160  }
  0x7a   : > { %1814 = vsyncadd (%p3101_p10), %s227_s24, 4294967136  ;;  %v1844_v0 = vmov 0.0   ;;  %vm284_vm0 = vcmask 1042432   ;;  %vm1845_vm1 = vmmov 1   ;;  %v277_v1 = vld [vmem:[#allocation2 + $0x8] sm:$0xff]  ;;  %v276_v3 = vld [vmem:[#allocation2] sm:$0xff]  ;;  %v437_v8 = vlaneseq }
  0x7b   : > { %355 = vmatprep.mubr.f32.mxu0 %v1844_v0  ;;  %vm1565_vm2 = vmpackc.low %vm284_vm0, %vm1845_vm1  ;;  %v279_v2 = vld [vmem:[#allocation2 + $0x18] sm:$0x7]  ;;  %v278_v5 = vld [vmem:[#allocation2 + $0x10] sm:$0x7]  ;;  %vm280_vm3 = vcmask 89088   ;;  %s1548_s8 = sshll.u32 %s2058_s23, 2 }
  0x7c   : > { %v1564_v4 = vpack.c.bf16 %v279_v2, %v277_v1  ;;  %v1567_v6 = vpack.c.bf16 %v278_v5, %v276_v3  ;;  %v275_v7 = vld [vmem:[%s230_s26] sm:$0x3]  ;;  %v2065_v9 = vshrl.u32 %v437_v8, 7  ;;  %s2361_s27 = scalar_lea.vmem [#allocation9], %s1548_s8  ;;  %s1546_s30 = sshll.u32 %s2058_s23, 3 }
  0x7d   : > { %s239_s14 = scalar_lea.vmem [#allocation7], %s1546_s30  ;;  %s1563_s21 = sshll.u32 %s1956_s25, 6 }
  0x7e   : > { %1566 = vmatprep.subr.msk.bf16.mxu0 %vm1565_vm2, %v1564_v4  ;;  %v2076_v15 = vadd.s32 8, %v2065_v9  ;;  %v2079_v17 = vsub.s32 0, %v2065_v9  ;;  %v2082_v18 = vadd.s32 16, %v2065_v9  ;;  %v2085_v19 = vadd.s32 24, %v2065_v9  ;;  %s1400_s5 = sshll.u32 %s2361_s27, 4  ;;  %s3005_s7 = scalar_lea.hbm %s3079_s4, %s1563_s21  ;;  %s1401_s5 = int_to_ptr.vmem [resolvable:$true] %s1400_s5 }
  0x7f   : > { %1569 = vmatpush1.bf16.msk.msra.mxu0 %vm1565_vm2, %v1567_v6  ;;  %v2088_v20 = vsub.s32 1, %v2065_v9  ;;  %v2091_v22 = vadd.s32 32, %v2065_v9  ;;  %v2094_v23 = vadd.s32 40, %v2065_v9  ;;  %v2097_v25 = vadd.s32 128, %v2065_v9  ;;  %s1372_s9 = scalar_lea.sflag [#allocation10], %s2058_s23  ;;  %s1735_s11 = scalar_lea.vmem %s1401_s5, 64 }
  0x80   : > { %v2100_v26 = vadd.s32 48, %v2065_v9  ;;  %v2103_v27 = vadd.s32 56, %v2065_v9  ;;  %v2106_v29 = vadd.s32 128, %v2076_v15  ;;  %v2109_v30 = vadd.s32 64, %v2065_v9  ;;  %p1736_p2 = scmp.ne.s32.totalorder %s1401_s5, %s1735_s11  ;;  %p3102_p4 = scmp.ne.s32.totalorder %s3091_s28, 0 }
  0x81   : > { %v2112_v31 = vadd.s32 72, %v2065_v9  ;;  %v2115_v33 = vadd.s32 128, %v2082_v18  ;;  %v2118_v34 = vadd.s32 128, %v2085_v19  ;;  %v2121_v35 = vadd.s32 80, %v2065_v9  ;;  %s1847_s1 = smov [#allocation9]  }
  0x82   : > { %1551 = vmatmul.mubr.msk.f32.vlgmr.msra.gmra.mrb[0].mxu0 %vm280_vm3, %v275_v7  ;;  %v2124_v37 = vadd.s32 128, %v2091_v22  ;;  %v2127_v38 = vadd.s32 128, %v2094_v23  ;;  %v2130_v39 = vadd.s32 88, %v2065_v9  ;;  %v2133_v42 = vadd.s32 128, %v2100_v26  ;;  %p1737_p0 = pnand %p1736_p2, %p3102_p4  ;;  %s1739_s10 = sshll.u32 %s1847_s1, 4  ;;  %s1740_s10 = int_to_ptr.vmem [resolvable:$false] %s1739_s10 }
  0x83   : > { %v2136_v43 = vadd.s32 128, %v2103_v27  ;;  %v2139_v46 = vadd.s32 128, %v2109_v30  ;;  %v2142_v47 = vadd.s32 128, %v2112_v31  ;;  %v2145_v51 = vadd.s32 128, %v2121_v35  ;;  %s1741_s20 = scalar_lea.vmem %s1740_s10, 128  ;;  %p1742_p13 = scmp.lt.s32.totalorder %s1401_s5, %s1740_s10 }
  0x84   : > { %v2148_v55 = vadd.s32 128, %v2130_v39  ;;  %p1738_p11 = pneg %p1737_p0  ;;  %p1743_p8 = scmp.lt.s32.totalorder %s1741_s20, %s1735_s11 }
  0x86   : > { %p1744_p5 = por %p1743_p8, %p1742_p13 }
  0x88   : > { %p1745_p7 = pnand %p1744_p5, %p1738_p11 }
 0x155   : > { %v2067_v10 = vpop.f32.mrb[0].mxu0 }
 0x156   : > { %v374_v11 = vmax.f32 %v2067_v10, 0.0  ;;  %v2070_v12 = vpop.f32.mrb[1].mxu0 }
 0x157   : > { %v364_v13 = vcombine.low %v2067_v10, %v2070_v12  ;;  %v375_v14 = vmax.f32 %v2070_v12, 0.0 }
 0x158   : > { %v376_v16 = vmin.f32 %v374_v11, 1.0 }
 0x159   : > { %v377_v21 = vmin.f32 %v375_v14, 1.0  ;;  %1552 = vst.sshfl [vmem:[%s2361_s27] sm:$0x33 pattern:$0x76325410] %v364_v13 }
 0x15a   : > { %v378_v24 = vmul.f32 15.0, %v376_v16 }
 0x15b   : > { %v379_v28 = vmul.f32 15.0, %v377_v21 }
 0x15c   : > { %v380_v32 = vfloor.f32 %v378_v24 }
 0x15d   : > { %v381_v36 = vfloor.f32 %v379_v28 }
 0x15e   : > { %v382_v40 = vsub.f32 %v378_v24, %v380_v32  ;;  %v1570_v41 = vtrunc.f32 %v380_v32 }
 0x15f   : > { %v383_v44 = vsub.f32 %v379_v28, %v381_v36  ;;  %v1572_v45 = vtrunc.f32 %v381_v36 }
 0x160   : > { %v1571_v48 = vcvt.f32.s32 %v1570_v41  ;;  %v392_v49 = vsub.f32 1.0, %v382_v40  ;;  %v406_v50 = vrot.slane %v382_v40, 1 }
 0x161   : > { %v1573_v52 = vcvt.f32.s32 %v1572_v45  ;;  %v393_v53 = vsub.f32 1.0, %v383_v44  ;;  %v407_v54 = vrot.slane %v383_v44, 1 }
 0x162   : > { %v386_v56 = vadd.s32 1, %v1571_v48  ;;  %v396_v57 = vrot.slane %v392_v49, 1  ;;  %v410_v58 = vmul.f32 %v406_v50, %v392_v49  ;;  %v412_v59 = vmul.f32 %v406_v50, %v382_v40 }
 0x163   : > { %v414_v60 = vmul.u32 16, %v1571_v48  ;;  %v416_v61 = vrot.slane %v1571_v48, 7  ;;  %v387_v62 = vadd.s32 1, %v1573_v52  ;;  %v397_v63 = vrot.slane %v393_v53, 1 }
 0x164   : > { %vm388_vm4 = vcmp.lt.s32.totalorder %v386_v56, 15  ;;  %v400_v0 = vmul.f32 %v396_v57, %v392_v49  ;;  %v402_v1 = vmul.f32 %v396_v57, %v382_v40  ;;  %v2151_v2 = vrot.slane %v410_v58, %v2079_v17 }
 0x165   : > { %v389_v3 = vsel %vm388_vm4, %v386_v56, 15  ;;  %v418_v4 = vadd.s32 %v416_v61, %v414_v60  ;;  %v2154_v5 = vrot.slane %v412_v59, %v2079_v17  ;;  %vm390_vm5 = vcmp.lt.s32.totalorder %v387_v62, 15 }
 0x166   : > { %v420_v6 = vrot.slane %v389_v3, 7  ;;  %v424_v7 = vmul.u32 16, %v389_v3  ;;  %v2157_v8 = vrot.slane %v400_v0, %v2079_v17  ;;  %v2160_v11 = vrot.slane %v402_v1, %v2079_v17 }
 0x167   : > { %v2163_v14 = vrot.slane %v418_v4, %v2088_v20  ;;  %v391_v16 = vsel %vm390_vm5, %v387_v62, 15  ;;  %v401_v21 = vmul.f32 %v397_v63, %v393_v53  ;;  %v403_v24 = vmul.f32 %v397_v63, %v383_v44 }
 0x168   : > { %v422_v28 = vadd.s32 %v420_v6, %v414_v60  ;;  %v426_v32 = vadd.s32 %v424_v7, %v416_v61  ;;  %v428_v36 = vadd.s32 %v424_v7, %v420_v6  ;;  %v411_v40 = vmul.f32 %v407_v54, %v393_v53 }
 0x169   : > { %v413_v41 = vmul.f32 %v407_v54, %v383_v44  ;;  %v415_v45 = vmul.u32 16, %v1573_v52  ;;  %v417_v48 = vrot.slane %v1573_v52, 7  ;;  %v421_v49 = vrot.slane %v391_v16, 7 }
 0x16a   : > { %v2166_v50 = vrot.slane %v422_v28, %v2088_v20  ;;  %v2169_v56 = vrot.slane %v426_v32, %v2088_v20  ;;  %v2172_v57 = vrot.slane %v428_v36, %v2088_v20  ;;  %v425_v58 = vmul.u32 16, %v391_v16 }
 0x16b   : > { %v419_v59 = vadd.s32 %v417_v48, %v415_v45  ;;  %v423_v62 = vadd.s32 %v421_v49, %v415_v45  ;;  %v2175_v60 = vrot.slane %v401_v21, %v2079_v17  ;;  %v2178_v44 = vrot.slane %v403_v24, %v2079_v17 }
 0x16c   : > { %v427_v52 = vadd.s32 %v425_v58, %v417_v48  ;;  %v429_v53 = vadd.s32 %v425_v58, %v421_v49  ;;  %v2181_v54 = vrot.slane %v411_v40, %v2079_v17  ;;  %v2184_v61 = vrot.slane %v413_v41, %v2079_v17 }
 0x16d   : > { %v2187_v63 = vrot.slane %v419_v59, %v2088_v20  ;;  %v2190_v0 = vrot.slane %v423_v62, %v2088_v20  ;;  %vm462_vm6 = vcmp.eq.s32.totalorder %v2065_v9, %v2163_v14  ;;  %vm464_vm7 = vcmp.eq.s32.totalorder %v2076_v15, %v2163_v14 }
 0x16e   : > { %v2197_v1 = vrot.slane %v427_v52, %v2088_v20  ;;  %v2200_v3 = vrot.slane %v429_v53, %v2088_v20  ;;  %v502_v17 = vsel %vm462_vm6, %v2157_v8, 0.0  ;;  %v504_v4 = vsel %vm464_vm7, %v2157_v8, 0.0 }
 0x16f   : > { %vm463_vm8 = vcmp.eq.s32.totalorder %v2065_v9, %v2187_v63  ;;  %vm465_vm9 = vcmp.eq.s32.totalorder %v2076_v15, %v2187_v63  ;;  %vm543_vm10 = vcmp.eq.s32.totalorder %v2065_v9, %v2190_v0  ;;  %vm545_vm11 = vcmp.eq.s32.totalorder %v2076_v15, %v2190_v0 }
 0x170   : > { %v503_v6 = vsel %vm463_vm8, %v2175_v60, 0.0  ;;  %v505_v20 = vsel %vm465_vm9, %v2175_v60, 0.0  ;;  %v583_v7 = vsel %vm543_vm10, %v2178_v44, 0.0  ;;  %v585_v16 = vsel %vm545_vm11, %v2178_v44, 0.0 }
 0x171   : > { %v615_v21 = vadd.f32 %v583_v7, %v503_v6  ;;  %v617_v24 = vadd.f32 %v585_v16, %v505_v20  ;;  %vm655_vm12 = vcmp.eq.s32.totalorder %v2065_v9, %v2197_v1  ;;  %vm657_vm13 = vcmp.eq.s32.totalorder %v2076_v15, %v2197_v1 }
 0x172   : > { %v695_v28 = vsel %vm655_vm12, %v2181_v54, 0.0  ;;  %v697_v32 = vsel %vm657_vm13, %v2181_v54, 0.0  ;;  %vm767_vm14 = vcmp.eq.s32.totalorder %v2065_v9, %v2200_v3  ;;  %vm769_vm15 = vcmp.eq.s32.totalorder %v2076_v15, %v2200_v3 }
 0x173   : > { %v727_v36 = vadd.f32 %v695_v28, %v615_v21  ;;  %v729_v40 = vadd.f32 %v697_v32, %v617_v24  ;;  %v807_v41 = vsel %vm767_vm14, %v2184_v61, 0.0  ;;  %v809_v45 = vsel %vm769_vm15, %v2184_v61, 0.0 }
 0x174   : > { %vm951_vm0 = vcmp.eq.s32.totalorder %v2097_v25, %v2187_v63  ;;  %vm953_vm1 = vcmp.eq.s32.totalorder %v2106_v29, %v2187_v63  ;;  %vm1015_vm2 = vcmp.eq.s32.totalorder %v2097_v25, %v2190_v0  ;;  %vm1017_vm3 = vcmp.eq.s32.totalorder %v2106_v29, %v2190_v0 }
 0x175   : > { %v839_v48 = vadd.f32 %v807_v41, %v727_v36  ;;  %v841_v49 = vadd.f32 %v809_v45, %v729_v40  ;;  %v983_v58 = vsel %vm951_vm0, %v2175_v60, 0.0  ;;  %v985_v59 = vsel %vm953_vm1, %v2175_v60, 0.0 }
 0x176   : > { %v1047_v62 = vsel %vm1015_vm2, %v2178_v44, 0.0  ;;  %v1049_v52 = vsel %vm1017_vm3, %v2178_v44, 0.0  ;;  %vm1111_vm4 = vcmp.eq.s32.totalorder %v2097_v25, %v2197_v1  ;;  %vm1113_vm5 = vcmp.eq.s32.totalorder %v2106_v29, %v2197_v1 }
 0x177   : > { %v871_v53 = vpack.c.bf16 %v841_v49, %v839_v48  ;;  %v1079_v6 = vadd.f32 %v1047_v62, %v983_v58  ;;  %v1081_v20 = vadd.f32 %v1049_v52, %v985_v59  ;;  %v1143_v7 = vsel %vm1111_vm4, %v2181_v54, 0.0 }
 0x178   : > { %v1145_v16 = vsel %vm1113_vm5, %v2181_v54, 0.0  ;;  %vm1207_vm6 = vcmp.eq.s32.totalorder %v2097_v25, %v2200_v3  ;;  %vm1209_vm7 = vcmp.eq.s32.totalorder %v2106_v29, %v2200_v3  ;;  %vm542_vm8 = vcmp.eq.s32.totalorder %v2065_v9, %v2166_v50 }
 0x179   : > { %886 = vmatprep.subr.bf16.mxu1 %v871_v53  ;;  %v1175_v21 = vadd.f32 %v1143_v7, %v1079_v6  ;;  %v1177_v24 = vadd.f32 %v1145_v16, %v1081_v20  ;;  %v1239_v28 = vsel %vm1207_vm6, %v2184_v61, 0.0  ;;  %v1241_v32 = vsel %vm1209_vm7, %v2184_v61, 0.0 }
 0x17a   : > { %vm544_vm9 = vcmp.eq.s32.totalorder %v2076_v15, %v2166_v50  ;;  %v582_v36 = vsel %vm542_vm8, %v2160_v11, 0.0  ;;  %vm654_vm10 = vcmp.eq.s32.totalorder %v2065_v9, %v2169_v56  ;;  %vm656_vm11 = vcmp.eq.s32.totalorder %v2076_v15, %v2169_v56 }
 0x17b   : > { %v1271_v40 = vadd.f32 %v1239_v28, %v1175_v21  ;;  %v1273_v41 = vadd.f32 %v1241_v32, %v1177_v24  ;;  %v584_v45 = vsel %vm544_vm9, %v2160_v11, 0.0  ;;  %v614_v48 = vadd.f32 %v582_v36, %v502_v17 }
 0x17c   : > { %v616_v49 = vadd.f32 %v584_v45, %v504_v4  ;;  %v694_v58 = vsel %vm654_vm10, %v2151_v2, 0.0  ;;  %v696_v59 = vsel %vm656_vm11, %v2151_v2, 0.0  ;;  %vm766_vm12 = vcmp.eq.s32.totalorder %v2065_v9, %v2172_v57 }
 0x17d   : > { %v1303_v62 = vpack.c.bf16 %v1273_v41, %v1271_v40  ;;  %v726_v52 = vadd.f32 %v694_v58, %v614_v48  ;;  %vm768_vm13 = vcmp.eq.s32.totalorder %v2076_v15, %v2172_v57  ;;  %v806_v53 = vsel %vm766_vm12, %v2154_v5, 0.0 }
 0x17e   : > { %v728_v6 = vadd.f32 %v696_v59, %v616_v49  ;;  %v808_v20 = vsel %vm768_vm13, %v2154_v5, 0.0  ;;  %vm950_vm14 = vcmp.eq.s32.totalorder %v2097_v25, %v2163_v14  ;;  %vm952_vm15 = vcmp.eq.s32.totalorder %v2106_v29, %v2163_v14 }
 0x17f   : > { %1318 = vmatprep.subr.bf16.mxu0 %v1303_v62  ;;  %v838_v17 = vadd.f32 %v806_v53, %v726_v52  ;;  %v982_v4 = vsel %vm950_vm14, %v2157_v8, 0.0  ;;  %v984_v7 = vsel %vm952_vm15, %v2157_v8, 0.0  ;;  %vm1014_vm0 = vcmp.eq.s32.totalorder %v2097_v25, %v2166_v50 }
 0x180   : > { %v840_v15 = vadd.f32 %v808_v20, %v728_v6  ;;  %vm1016_vm1 = vcmp.eq.s32.totalorder %v2106_v29, %v2166_v50  ;;  %v1046_v16 = vsel %vm1014_vm0, %v2160_v11, 0.0  ;;  %vm1110_vm2 = vcmp.eq.s32.totalorder %v2097_v25, %v2169_v56 }
 0x181   : > { %v1048_v21 = vsel %vm1016_vm1, %v2160_v11, 0.0  ;;  %v1078_v24 = vadd.f32 %v1046_v16, %v982_v4  ;;  %vm1112_vm3 = vcmp.eq.s32.totalorder %v2106_v29, %v2169_v56  ;;  %v1142_v28 = vsel %vm1110_vm2, %v2151_v2, 0.0 }
 0x182   : > { %v870_v32 = vpack.c.bf16 %v840_v15, %v838_v17  ;;  %v1080_v36 = vadd.f32 %v1048_v21, %v984_v7  ;;  %v1144_v40 = vsel %vm1112_vm3, %v2151_v2, 0.0  ;;  %vm1206_vm4 = vcmp.eq.s32.totalorder %v2097_v25, %v2172_v57 }
 0x183   : > { %v1174_v41 = vadd.f32 %v1142_v28, %v1078_v24  ;;  %vm1208_vm5 = vcmp.eq.s32.totalorder %v2106_v29, %v2172_v57  ;;  %v1238_v45 = vsel %vm1206_vm4, %v2154_v5, 0.0  ;;  %vm467_vm6 = vcmp.eq.s32.totalorder %v2082_v18, %v2187_v63 }
 0x184   : > { %887 = vmatpush1.bf16.msra.mxu1 %v870_v32  ;;  %v1176_v48 = vadd.f32 %v1144_v40, %v1080_v36  ;;  %v1240_v49 = vsel %vm1208_vm5, %v2154_v5, 0.0  ;;  %vm469_vm7 = vcmp.eq.s32.totalorder %v2085_v19, %v2187_v63  ;;  %v507_v58 = vsel %vm467_vm6, %v2175_v60, 0.0 }
 0x185   : > { %v1270_v59 = vadd.f32 %v1238_v45, %v1174_v41  ;;  %v509_v25 = vsel %vm469_vm7, %v2175_v60, 0.0  ;;  %vm547_vm8 = vcmp.eq.s32.totalorder %v2082_v18, %v2190_v0  ;;  %vm549_vm9 = vcmp.eq.s32.totalorder %v2085_v19, %v2190_v0 }
 0x186   : > { %v1272_v29 = vadd.f32 %v1240_v49, %v1176_v48  ;;  %v587_v62 = vsel %vm547_vm8, %v2178_v44, 0.0  ;;  %v589_v52 = vsel %vm549_vm9, %v2178_v44, 0.0  ;;  %vm659_vm10 = vcmp.eq.s32.totalorder %v2082_v18, %v2197_v1 }
 0x187   : > { %v619_v53 = vadd.f32 %v587_v62, %v507_v58  ;;  %v621_v6 = vadd.f32 %v589_v52, %v509_v25  ;;  %vm661_vm11 = vcmp.eq.s32.totalorder %v2085_v19, %v2197_v1  ;;  %v699_v20 = vsel %vm659_vm10, %v2181_v54, 0.0 }
 0x188   : > { %v1302_v17 = vpack.c.bf16 %v1272_v29, %v1270_v59  ;;  %v701_v4 = vsel %vm661_vm11, %v2181_v54, 0.0  ;;  %vm771_vm12 = vcmp.eq.s32.totalorder %v2082_v18, %v2200_v3  ;;  %vm773_vm13 = vcmp.eq.s32.totalorder %v2085_v19, %v2200_v3 }
 0x189   : > { %v731_v7 = vadd.f32 %v699_v20, %v619_v53  ;;  %v733_v15 = vadd.f32 %v701_v4, %v621_v6  ;;  %v811_v16 = vsel %vm771_vm12, %v2184_v61, 0.0  ;;  %v813_v21 = vsel %vm773_vm13, %v2184_v61, 0.0 }
 0x18a   : > { %1319 = vmatpush1.bf16.msra.mxu0 %v1302_v17  ;;  %vm955_vm14 = vcmp.eq.s32.totalorder %v2115_v33, %v2187_v63  ;;  %vm957_vm15 = vcmp.eq.s32.totalorder %v2118_v34, %v2187_v63  ;;  %vm1019_vm0 = vcmp.eq.s32.totalorder %v2115_v33, %v2190_v0  ;;  %vm1021_vm1 = vcmp.eq.s32.totalorder %v2118_v34, %v2190_v0 }
 0x18b   : > { %v843_v24 = vadd.f32 %v811_v16, %v731_v7  ;;  %v845_v28 = vadd.f32 %v813_v21, %v733_v15  ;;  %v987_v32 = vsel %vm955_vm14, %v2175_v60, 0.0  ;;  %v989_v36 = vsel %vm957_vm15, %v2175_v60, 0.0 }
 0x18c   : > { %v1051_v40 = vsel %vm1019_vm0, %v2178_v44, 0.0  ;;  %v1053_v41 = vsel %vm1021_vm1, %v2178_v44, 0.0  ;;  %vm1115_vm2 = vcmp.eq.s32.totalorder %v2115_v33, %v2197_v1  ;;  %vm1117_vm3 = vcmp.eq.s32.totalorder %v2118_v34, %v2197_v1 }
 0x18d   : > { %v873_v45 = vpack.c.bf16 %v845_v28, %v843_v24  ;;  %v1083_v48 = vadd.f32 %v1051_v40, %v987_v32  ;;  %v1085_v49 = vadd.f32 %v1053_v41, %v989_v36  ;;  %v1147_v58 = vsel %vm1115_vm2, %v2181_v54, 0.0 }
 0x18e   : > { %v1149_v59 = vsel %vm1117_vm3, %v2181_v54, 0.0  ;;  %vm1211_vm4 = vcmp.eq.s32.totalorder %v2115_v33, %v2200_v3  ;;  %vm1213_vm5 = vcmp.eq.s32.totalorder %v2118_v34, %v2200_v3  ;;  %vm466_vm6 = vcmp.eq.s32.totalorder %v2082_v18, %v2163_v14 }
 0x18f   : > { %888 = vmatprep.subr.bf16.mxu1 %v873_v45  ;;  %v1179_v25 = vadd.f32 %v1147_v58, %v1083_v48  ;;  %v1181_v29 = vadd.f32 %v1149_v59, %v1085_v49  ;;  %v1243_v62 = vsel %vm1211_vm4, %v2184_v61, 0.0  ;;  %v1245_v52 = vsel %vm1213_vm5, %v2184_v61, 0.0 }
 0x190   : > { %vm468_vm7 = vcmp.eq.s32.totalorder %v2085_v19, %v2163_v14  ;;  %v506_v53 = vsel %vm466_vm6, %v2157_v8, 0.0  ;;  %vm546_vm8 = vcmp.eq.s32.totalorder %v2082_v18, %v2166_v50  ;;  %vm548_vm9 = vcmp.eq.s32.totalorder %v2085_v19, %v2166_v50 }
 0x191   : > { %v1275_v6 = vadd.f32 %v1243_v62, %v1179_v25  ;;  %v1277_v20 = vadd.f32 %v1245_v52, %v1181_v29  ;;  %v508_v17 = vsel %vm468_vm7, %v2157_v8, 0.0  ;;  %v586_v4 = vsel %vm546_vm8, %v2160_v11, 0.0 }
 0x192   : > { %v588_v7 = vsel %vm548_vm9, %v2160_v11, 0.0  ;;  %v618_v15 = vadd.f32 %v586_v4, %v506_v53  ;;  %vm658_vm10 = vcmp.eq.s32.totalorder %v2082_v18, %v2169_v56  ;;  %vm660_vm11 = vcmp.eq.s32.totalorder %v2085_v19, %v2169_v56 }
 0x193   : > { %v1305_v16 = vpack.c.bf16 %v1277_v20, %v1275_v6  ;;  %v620_v21 = vadd.f32 %v588_v7, %v508_v17  ;;  %v698_v24 = vsel %vm658_vm10, %v2151_v2, 0.0  ;;  %v700_v28 = vsel %vm660_vm11, %v2151_v2, 0.0 }
 0x194   : > { %v730_v32 = vadd.f32 %v698_v24, %v618_v15  ;;  %vm770_vm12 = vcmp.eq.s32.totalorder %v2082_v18, %v2172_v57  ;;  %vm772_vm13 = vcmp.eq.s32.totalorder %v2085_v19, %v2172_v57  ;;  %vm954_vm14 = vcmp.eq.s32.totalorder %v2115_v33, %v2163_v14 }
 0x195   : > { %1320 = vmatprep.subr.bf16.mxu0 %v1305_v16  ;;  %v732_v36 = vadd.f32 %v700_v28, %v620_v21  ;;  %v810_v40 = vsel %vm770_vm12, %v2154_v5, 0.0  ;;  %v812_v41 = vsel %vm772_vm13, %v2154_v5, 0.0  ;;  %vm956_vm15 = vcmp.eq.s32.totalorder %v2118_v34, %v2163_v14 }
 0x196   : > { %v842_v10 = vadd.f32 %v810_v40, %v730_v32  ;;  %v986_v12 = vsel %vm954_vm14, %v2157_v8, 0.0  ;;  %v988_v13 = vsel %vm956_vm15, %v2157_v8, 0.0  ;;  %vm1018_vm0 = vcmp.eq.s32.totalorder %v2115_v33, %v2166_v50 }
 0x197   : > { %v844_v18 = vadd.f32 %v812_v41, %v732_v36  ;;  %vm1020_vm1 = vcmp.eq.s32.totalorder %v2118_v34, %v2166_v50  ;;  %v1050_v19 = vsel %vm1018_vm0, %v2160_v11, 0.0  ;;  %vm1114_vm2 = vcmp.eq.s32.totalorder %v2115_v33, %v2169_v56 }
 0x198   : > { %v1052_v45 = vsel %vm1020_vm1, %v2160_v11, 0.0  ;;  %v1082_v48 = vadd.f32 %v1050_v19, %v986_v12  ;;  %vm1116_vm3 = vcmp.eq.s32.totalorder %v2118_v34, %v2169_v56  ;;  %v1146_v49 = vsel %vm1114_vm2, %v2151_v2, 0.0 }
 0x199   : > { %v872_v58 = vpack.c.bf16 %v844_v18, %v842_v10  ;;  %v1084_v59 = vadd.f32 %v1052_v45, %v988_v13  ;;  %v1148_v25 = vsel %vm1116_vm3, %v2151_v2, 0.0  ;;  %vm1210_vm4 = vcmp.eq.s32.totalorder %v2115_v33, %v2172_v57 }
 0x19a   : > { %v1178_v29 = vadd.f32 %v1146_v49, %v1082_v48  ;;  %vm1212_vm5 = vcmp.eq.s32.totalorder %v2118_v34, %v2172_v57  ;;  %v1242_v62 = vsel %vm1210_vm4, %v2154_v5, 0.0  ;;  %vm471_vm6 = vcmp.eq.s32.totalorder %v2091_v22, %v2187_v63 }
 0x19b   : > { %889 = vmatpush1.bf16.msra.mxu1 %v872_v58  ;;  %v1180_v52 = vadd.f32 %v1148_v25, %v1084_v59  ;;  %v1244_v53 = vsel %vm1212_vm5, %v2154_v5, 0.0  ;;  %vm473_vm7 = vcmp.eq.s32.totalorder %v2094_v23, %v2187_v63  ;;  %v511_v6 = vsel %vm471_vm6, %v2175_v60, 0.0 }
 0x19c   : > { %v1274_v20 = vadd.f32 %v1242_v62, %v1178_v29  ;;  %v513_v33 = vsel %vm473_vm7, %v2175_v60, 0.0  ;;  %vm551_vm8 = vcmp.eq.s32.totalorder %v2091_v22, %v2190_v0  ;;  %vm553_vm9 = vcmp.eq.s32.totalorder %v2094_v23, %v2190_v0 }
 0x19d   : > { %v1276_v34 = vadd.f32 %v1244_v53, %v1180_v52  ;;  %v591_v17 = vsel %vm551_vm8, %v2178_v44, 0.0  ;;  %v593_v4 = vsel %vm553_vm9, %v2178_v44, 0.0  ;;  %vm663_vm10 = vcmp.eq.s32.totalorder %v2091_v22, %v2197_v1 }
 0x19e   : > { %v623_v7 = vadd.f32 %v591_v17, %v511_v6  ;;  %v625_v15 = vadd.f32 %v593_v4, %v513_v33  ;;  %vm665_vm11 = vcmp.eq.s32.totalorder %v2094_v23, %v2197_v1  ;;  %v703_v16 = vsel %vm663_vm10, %v2181_v54, 0.0 }
 0x19f   : > { %v1304_v21 = vpack.c.bf16 %v1276_v34, %v1274_v20  ;;  %v705_v24 = vsel %vm665_vm11, %v2181_v54, 0.0  ;;  %vm775_vm12 = vcmp.eq.s32.totalorder %v2091_v22, %v2200_v3  ;;  %vm777_vm13 = vcmp.eq.s32.totalorder %v2094_v23, %v2200_v3 }
 0x1a0   : > { %v735_v28 = vadd.f32 %v703_v16, %v623_v7  ;;  %v737_v32 = vadd.f32 %v705_v24, %v625_v15  ;;  %v815_v36 = vsel %vm775_vm12, %v2184_v61, 0.0  ;;  %v817_v40 = vsel %vm777_vm13, %v2184_v61, 0.0 }
 0x1a1   : > { %1321 = vmatpush1.bf16.msra.mxu0 %v1304_v21  ;;  %vm959_vm14 = vcmp.eq.s32.totalorder %v2124_v37, %v2187_v63  ;;  %vm961_vm15 = vcmp.eq.s32.totalorder %v2127_v38, %v2187_v63  ;;  %vm1023_vm0 = vcmp.eq.s32.totalorder %v2124_v37, %v2190_v0  ;;  %vm1025_vm1 = vcmp.eq.s32.totalorder %v2127_v38, %v2190_v0 }
 0x1a2   : > { %v847_v41 = vadd.f32 %v815_v36, %v735_v28  ;;  %v849_v10 = vadd.f32 %v817_v40, %v737_v32  ;;  %v991_v12 = vsel %vm959_vm14, %v2175_v60, 0.0  ;;  %v993_v13 = vsel %vm961_vm15, %v2175_v60, 0.0 }
 0x1a3   : > { %v1055_v18 = vsel %vm1023_vm0, %v2178_v44, 0.0  ;;  %v1057_v19 = vsel %vm1025_vm1, %v2178_v44, 0.0  ;;  %vm1119_vm2 = vcmp.eq.s32.totalorder %v2124_v37, %v2197_v1  ;;  %vm1121_vm3 = vcmp.eq.s32.totalorder %v2127_v38, %v2197_v1 }
 0x1a4   : > { %v875_v45 = vpack.c.bf16 %v849_v10, %v847_v41  ;;  %v1087_v48 = vadd.f32 %v1055_v18, %v991_v12  ;;  %v1089_v49 = vadd.f32 %v1057_v19, %v993_v13  ;;  %v1151_v58 = vsel %vm1119_vm2, %v2181_v54, 0.0 }
 0x1a5   : > { %v1153_v59 = vsel %vm1121_vm3, %v2181_v54, 0.0  ;;  %vm1215_vm4 = vcmp.eq.s32.totalorder %v2124_v37, %v2200_v3  ;;  %vm1217_vm5 = vcmp.eq.s32.totalorder %v2127_v38, %v2200_v3  ;;  %vm470_vm6 = vcmp.eq.s32.totalorder %v2091_v22, %v2163_v14 }
 0x1a6   : > { %890 = vmatprep.subr.bf16.mxu1 %v875_v45  ;;  %v1183_v25 = vadd.f32 %v1151_v58, %v1087_v48  ;;  %v1185_v29 = vadd.f32 %v1153_v59, %v1089_v49  ;;  %v1247_v62 = vsel %vm1215_vm4, %v2184_v61, 0.0  ;;  %v1249_v52 = vsel %vm1217_vm5, %v2184_v61, 0.0 }
 0x1a7   : > { %vm472_vm7 = vcmp.eq.s32.totalorder %v2094_v23, %v2163_v14  ;;  %v510_v53 = vsel %vm470_vm6, %v2157_v8, 0.0  ;;  %vm550_vm8 = vcmp.eq.s32.totalorder %v2091_v22, %v2166_v50  ;;  %vm552_vm9 = vcmp.eq.s32.totalorder %v2094_v23, %v2166_v50 }
 0x1a8   : > { %v1279_v6 = vadd.f32 %v1247_v62, %v1183_v25  ;;  %v1281_v20 = vadd.f32 %v1249_v52, %v1185_v29  ;;  %v512_v33 = vsel %vm472_vm7, %v2157_v8, 0.0  ;;  %v590_v34 = vsel %vm550_vm8, %v2160_v11, 0.0 }
 0x1a9   : > { %v592_v17 = vsel %vm552_vm9, %v2160_v11, 0.0  ;;  %v622_v4 = vadd.f32 %v590_v34, %v510_v53  ;;  %vm662_vm10 = vcmp.eq.s32.totalorder %v2091_v22, %v2169_v56  ;;  %vm664_vm11 = vcmp.eq.s32.totalorder %v2094_v23, %v2169_v56 }
 0x1aa   : > { %v1307_v7 = vpack.c.bf16 %v1281_v20, %v1279_v6  ;;  %v624_v15 = vadd.f32 %v592_v17, %v512_v33  ;;  %v702_v16 = vsel %vm662_vm10, %v2151_v2, 0.0  ;;  %v704_v21 = vsel %vm664_vm11, %v2151_v2, 0.0 }
 0x1ab   : > { %v734_v24 = vadd.f32 %v702_v16, %v622_v4  ;;  %vm774_vm12 = vcmp.eq.s32.totalorder %v2091_v22, %v2172_v57  ;;  %vm776_vm13 = vcmp.eq.s32.totalorder %v2094_v23, %v2172_v57  ;;  %vm958_vm14 = vcmp.eq.s32.totalorder %v2124_v37, %v2163_v14 }
 0x1ac   : > { %1322 = vmatprep.subr.bf16.mxu0 %v1307_v7  ;;  %v736_v28 = vadd.f32 %v704_v21, %v624_v15  ;;  %v814_v32 = vsel %vm774_vm12, %v2154_v5, 0.0  ;;  %v816_v36 = vsel %vm776_vm13, %v2154_v5, 0.0  ;;  %vm960_vm15 = vcmp.eq.s32.totalorder %v2127_v38, %v2163_v14 }
 0x1ad   : > { %v846_v40 = vadd.f32 %v814_v32, %v734_v24  ;;  %v990_v41 = vsel %vm958_vm14, %v2157_v8, 0.0  ;;  %v992_v22 = vsel %vm960_vm15, %v2157_v8, 0.0  ;;  %vm1022_vm0 = vcmp.eq.s32.totalorder %v2124_v37, %v2166_v50 }
 0x1ae   : > { %v848_v23 = vadd.f32 %v816_v36, %v736_v28  ;;  %vm1024_vm1 = vcmp.eq.s32.totalorder %v2127_v38, %v2166_v50  ;;  %v1054_v10 = vsel %vm1022_vm0, %v2160_v11, 0.0  ;;  %vm1118_vm2 = vcmp.eq.s32.totalorder %v2124_v37, %v2169_v56 }
 0x1af   : > { %v1056_v12 = vsel %vm1024_vm1, %v2160_v11, 0.0  ;;  %v1086_v13 = vadd.f32 %v1054_v10, %v990_v41  ;;  %vm1120_vm3 = vcmp.eq.s32.totalorder %v2127_v38, %v2169_v56  ;;  %v1150_v18 = vsel %vm1118_vm2, %v2151_v2, 0.0 }
 0x1b0   : > { %v874_v19 = vpack.c.bf16 %v848_v23, %v846_v40  ;;  %v1088_v45 = vadd.f32 %v1056_v12, %v992_v22  ;;  %v1152_v48 = vsel %vm1120_vm3, %v2151_v2, 0.0  ;;  %vm1214_vm4 = vcmp.eq.s32.totalorder %v2124_v37, %v2172_v57 }
 0x1b1   : > { %v1182_v49 = vadd.f32 %v1150_v18, %v1086_v13  ;;  %vm1216_vm5 = vcmp.eq.s32.totalorder %v2127_v38, %v2172_v57  ;;  %v1246_v58 = vsel %vm1214_vm4, %v2154_v5, 0.0  ;;  %vm475_vm6 = vcmp.eq.s32.totalorder %v2100_v26, %v2187_v63 }
 0x1b2   : > { %891 = vmatpush1.bf16.msra.mxu1 %v874_v19  ;;  %v1184_v59 = vadd.f32 %v1152_v48, %v1088_v45  ;;  %v1248_v25 = vsel %vm1216_vm5, %v2154_v5, 0.0  ;;  %vm477_vm7 = vcmp.eq.s32.totalorder %v2103_v27, %v2187_v63  ;;  %v515_v29 = vsel %vm475_vm6, %v2175_v60, 0.0 }
 0x1b3   : > { %v1278_v62 = vadd.f32 %v1246_v58, %v1182_v49  ;;  %v517_v37 = vsel %vm477_vm7, %v2175_v60, 0.0  ;;  %vm555_vm8 = vcmp.eq.s32.totalorder %v2100_v26, %v2190_v0  ;;  %vm557_vm9 = vcmp.eq.s32.totalorder %v2103_v27, %v2190_v0 }
 0x1b4   : > { %v1280_v38 = vadd.f32 %v1248_v25, %v1184_v59  ;;  %v595_v52 = vsel %vm555_vm8, %v2178_v44, 0.0  ;;  %v597_v53 = vsel %vm557_vm9, %v2178_v44, 0.0  ;;  %vm667_vm10 = vcmp.eq.s32.totalorder %v2100_v26, %v2197_v1 }
 0x1b5   : > { %v627_v6 = vadd.f32 %v595_v52, %v515_v29  ;;  %v629_v20 = vadd.f32 %v597_v53, %v517_v37  ;;  %vm669_vm11 = vcmp.eq.s32.totalorder %v2103_v27, %v2197_v1  ;;  %v707_v33 = vsel %vm667_vm10, %v2181_v54, 0.0 }
 0x1b6   : > { %v1306_v34 = vpack.c.bf16 %v1280_v38, %v1278_v62  ;;  %v709_v17 = vsel %vm669_vm11, %v2181_v54, 0.0  ;;  %vm779_vm12 = vcmp.eq.s32.totalorder %v2100_v26, %v2200_v3  ;;  %vm781_vm13 = vcmp.eq.s32.totalorder %v2103_v27, %v2200_v3 }
 0x1b7   : > { %v739_v4 = vadd.f32 %v707_v33, %v627_v6  ;;  %v741_v7 = vadd.f32 %v709_v17, %v629_v20  ;;  %v819_v15 = vsel %vm779_vm12, %v2184_v61, 0.0  ;;  %v821_v16 = vsel %vm781_vm13, %v2184_v61, 0.0 }
 0x1b8   : > { %1323 = vmatpush1.bf16.msra.mxu0 %v1306_v34  ;;  %vm963_vm14 = vcmp.eq.s32.totalorder %v2133_v42, %v2187_v63  ;;  %vm965_vm15 = vcmp.eq.s32.totalorder %v2136_v43, %v2187_v63  ;;  %vm1027_vm0 = vcmp.eq.s32.totalorder %v2133_v42, %v2190_v0  ;;  %vm1029_vm1 = vcmp.eq.s32.totalorder %v2136_v43, %v2190_v0 }
 0x1b9   : > { %v851_v21 = vadd.f32 %v819_v15, %v739_v4  ;;  %v853_v24 = vadd.f32 %v821_v16, %v741_v7  ;;  %v995_v28 = vsel %vm963_vm14, %v2175_v60, 0.0  ;;  %v997_v32 = vsel %vm965_vm15, %v2175_v60, 0.0 }
 0x1ba   : > { %v1059_v36 = vsel %vm1027_vm0, %v2178_v44, 0.0  ;;  %v1061_v40 = vsel %vm1029_vm1, %v2178_v44, 0.0  ;;  %vm1123_vm2 = vcmp.eq.s32.totalorder %v2133_v42, %v2197_v1  ;;  %vm1125_vm3 = vcmp.eq.s32.totalorder %v2136_v43, %v2197_v1 }
 0x1bb   : > { %v877_v41 = vpack.c.bf16 %v853_v24, %v851_v21  ;;  %v1091_v22 = vadd.f32 %v1059_v36, %v995_v28  ;;  %v1093_v23 = vadd.f32 %v1061_v40, %v997_v32  ;;  %v1155_v10 = vsel %vm1123_vm2, %v2181_v54, 0.0 }
 0x1bc   : > { %v1157_v12 = vsel %vm1125_vm3, %v2181_v54, 0.0  ;;  %vm1219_vm4 = vcmp.eq.s32.totalorder %v2133_v42, %v2200_v3  ;;  %vm1221_vm5 = vcmp.eq.s32.totalorder %v2136_v43, %v2200_v3  ;;  %vm474_vm6 = vcmp.eq.s32.totalorder %v2100_v26, %v2163_v14 }
 0x1bd   : > { %892 = vmatprep.subr.bf16.mxu1 %v877_v41  ;;  %v1187_v13 = vadd.f32 %v1155_v10, %v1091_v22  ;;  %v1189_v18 = vadd.f32 %v1157_v12, %v1093_v23  ;;  %v1251_v19 = vsel %vm1219_vm4, %v2184_v61, 0.0  ;;  %v1253_v45 = vsel %vm1221_vm5, %v2184_v61, 0.0 }
 0x1be   : > { %vm476_vm7 = vcmp.eq.s32.totalorder %v2103_v27, %v2163_v14  ;;  %v514_v48 = vsel %vm474_vm6, %v2157_v8, 0.0  ;;  %vm554_vm8 = vcmp.eq.s32.totalorder %v2100_v26, %v2166_v50  ;;  %vm556_vm9 = vcmp.eq.s32.totalorder %v2103_v27, %v2166_v50 }
 0x1bf   : > { %v1283_v49 = vadd.f32 %v1251_v19, %v1187_v13  ;;  %v1285_v58 = vadd.f32 %v1253_v45, %v1189_v18  ;;  %v516_v59 = vsel %vm476_vm7, %v2157_v8, 0.0  ;;  %v594_v25 = vsel %vm554_vm8, %v2160_v11, 0.0 }
 0x1c0   : > { %v596_v29 = vsel %vm556_vm9, %v2160_v11, 0.0  ;;  %v626_v62 = vadd.f32 %v594_v25, %v514_v48  ;;  %vm666_vm10 = vcmp.eq.s32.totalorder %v2100_v26, %v2169_v56  ;;  %vm668_vm11 = vcmp.eq.s32.totalorder %v2103_v27, %v2169_v56 }
 0x1c1   : > { %v1309_v37 = vpack.c.bf16 %v1285_v58, %v1283_v49  ;;  %v628_v38 = vadd.f32 %v596_v29, %v516_v59  ;;  %v706_v52 = vsel %vm666_vm10, %v2151_v2, 0.0  ;;  %v708_v53 = vsel %vm668_vm11, %v2151_v2, 0.0 }
 0x1c2   : > { %v738_v6 = vadd.f32 %v706_v52, %v626_v62  ;;  %vm778_vm12 = vcmp.eq.s32.totalorder %v2100_v26, %v2172_v57  ;;  %vm780_vm13 = vcmp.eq.s32.totalorder %v2103_v27, %v2172_v57  ;;  %vm962_vm14 = vcmp.eq.s32.totalorder %v2133_v42, %v2163_v14 }
 0x1c3   : > { %1324 = vmatprep.subr.bf16.mxu0 %v1309_v37  ;;  %v740_v20 = vadd.f32 %v708_v53, %v628_v38  ;;  %v818_v33 = vsel %vm778_vm12, %v2154_v5, 0.0  ;;  %v820_v34 = vsel %vm780_vm13, %v2154_v5, 0.0  ;;  %vm964_vm15 = vcmp.eq.s32.totalorder %v2136_v43, %v2163_v14 }
 0x1c4   : > { %v850_v17 = vadd.f32 %v818_v33, %v738_v6  ;;  %v994_v4 = vsel %vm962_vm14, %v2157_v8, 0.0  ;;  %v996_v26 = vsel %vm964_vm15, %v2157_v8, 0.0  ;;  %vm1026_vm0 = vcmp.eq.s32.totalorder %v2133_v42, %v2166_v50 }
 0x1c5   : > { %v852_v27 = vadd.f32 %v820_v34, %v740_v20  ;;  %vm1028_vm1 = vcmp.eq.s32.totalorder %v2136_v43, %v2166_v50  ;;  %v1058_v7 = vsel %vm1026_vm0, %v2160_v11, 0.0  ;;  %vm1122_vm2 = vcmp.eq.s32.totalorder %v2133_v42, %v2169_v56 }
 0x1c6   : > { %v1060_v15 = vsel %vm1028_vm1, %v2160_v11, 0.0  ;;  %v1090_v16 = vadd.f32 %v1058_v7, %v994_v4  ;;  %vm1124_vm3 = vcmp.eq.s32.totalorder %v2136_v43, %v2169_v56  ;;  %v1154_v21 = vsel %vm1122_vm2, %v2151_v2, 0.0 }
 0x1c7   : > { %v876_v24 = vpack.c.bf16 %v852_v27, %v850_v17  ;;  %v1092_v28 = vadd.f32 %v1060_v15, %v996_v26  ;;  %v1156_v32 = vsel %vm1124_vm3, %v2151_v2, 0.0  ;;  %vm1218_vm4 = vcmp.eq.s32.totalorder %v2133_v42, %v2172_v57 }
 0x1c8   : > { %v1186_v36 = vadd.f32 %v1154_v21, %v1090_v16  ;;  %vm1220_vm5 = vcmp.eq.s32.totalorder %v2136_v43, %v2172_v57  ;;  %v1250_v40 = vsel %vm1218_vm4, %v2154_v5, 0.0  ;;  %vm479_vm6 = vcmp.eq.s32.totalorder %v2109_v30, %v2187_v63 }
 0x1c9   : > { %893 = vmatpush1.bf16.msra.mxu1 %v876_v24  ;;  %v1188_v41 = vadd.f32 %v1156_v32, %v1092_v28  ;;  %v1252_v22 = vsel %vm1220_vm5, %v2154_v5, 0.0  ;;  %vm481_vm7 = vcmp.eq.s32.totalorder %v2112_v31, %v2187_v63  ;;  %v519_v23 = vsel %vm479_vm6, %v2175_v60, 0.0 }
 0x1ca   : > { %v1282_v10 = vadd.f32 %v1250_v40, %v1186_v36  ;;  %v521_v42 = vsel %vm481_vm7, %v2175_v60, 0.0  ;;  %vm559_vm8 = vcmp.eq.s32.totalorder %v2109_v30, %v2190_v0  ;;  %vm561_vm9 = vcmp.eq.s32.totalorder %v2112_v31, %v2190_v0 }
 0x1cb   : > { %v1284_v43 = vadd.f32 %v1252_v22, %v1188_v41  ;;  %v599_v12 = vsel %vm559_vm8, %v2178_v44, 0.0  ;;  %v601_v13 = vsel %vm561_vm9, %v2178_v44, 0.0  ;;  %vm671_vm10 = vcmp.eq.s32.totalorder %v2109_v30, %v2197_v1 }
 0x1cc   : > { %v631_v18 = vadd.f32 %v599_v12, %v519_v23  ;;  %v633_v19 = vadd.f32 %v601_v13, %v521_v42  ;;  %vm673_vm11 = vcmp.eq.s32.totalorder %v2112_v31, %v2197_v1  ;;  %v711_v45 = vsel %vm671_vm10, %v2181_v54, 0.0 }
 0x1cd   : > { %v1308_v48 = vpack.c.bf16 %v1284_v43, %v1282_v10  ;;  %v713_v49 = vsel %vm673_vm11, %v2181_v54, 0.0  ;;  %vm783_vm12 = vcmp.eq.s32.totalorder %v2109_v30, %v2200_v3  ;;  %vm785_vm13 = vcmp.eq.s32.totalorder %v2112_v31, %v2200_v3 }
 0x1ce   : > { %v743_v58 = vadd.f32 %v711_v45, %v631_v18  ;;  %v745_v59 = vadd.f32 %v713_v49, %v633_v19  ;;  %v823_v25 = vsel %vm783_vm12, %v2184_v61, 0.0  ;;  %v825_v29 = vsel %vm785_vm13, %v2184_v61, 0.0 }
 0x1cf   : > { %1325 = vmatpush1.bf16.msra.mxu0 %v1308_v48  ;;  %vm967_vm14 = vcmp.eq.s32.totalorder %v2139_v46, %v2187_v63  ;;  %vm969_vm15 = vcmp.eq.s32.totalorder %v2142_v47, %v2187_v63  ;;  %vm1031_vm0 = vcmp.eq.s32.totalorder %v2139_v46, %v2190_v0  ;;  %vm1033_vm1 = vcmp.eq.s32.totalorder %v2142_v47, %v2190_v0 }
 0x1d0   : > { %v855_v62 = vadd.f32 %v823_v25, %v743_v58  ;;  %v857_v37 = vadd.f32 %v825_v29, %v745_v59  ;;  %v999_v38 = vsel %vm967_vm14, %v2175_v60, 0.0  ;;  %v1001_v52 = vsel %vm969_vm15, %v2175_v60, 0.0 }
 0x1d1   : > { %v1063_v53 = vsel %vm1031_vm0, %v2178_v44, 0.0  ;;  %v1065_v6 = vsel %vm1033_vm1, %v2178_v44, 0.0  ;;  %vm1127_vm2 = vcmp.eq.s32.totalorder %v2139_v46, %v2197_v1  ;;  %vm1129_vm3 = vcmp.eq.s32.totalorder %v2142_v47, %v2197_v1 }
 0x1d2   : > { %v879_v20 = vpack.c.bf16 %v857_v37, %v855_v62  ;;  %v1095_v33 = vadd.f32 %v1063_v53, %v999_v38  ;;  %v1097_v34 = vadd.f32 %v1065_v6, %v1001_v52  ;;  %v1159_v17 = vsel %vm1127_vm2, %v2181_v54, 0.0 }
 0x1d3   : > { %v1161_v4 = vsel %vm1129_vm3, %v2181_v54, 0.0  ;;  %vm1223_vm4 = vcmp.eq.s32.totalorder %v2139_v46, %v2200_v3  ;;  %vm1225_vm5 = vcmp.eq.s32.totalorder %v2142_v47, %v2200_v3  ;;  %vm478_vm6 = vcmp.eq.s32.totalorder %v2109_v30, %v2163_v14 }
 0x1d4   : > { %894 = vmatprep.subr.bf16.mxu1 %v879_v20  ;;  %v1191_v26 = vadd.f32 %v1159_v17, %v1095_v33  ;;  %v1193_v27 = vadd.f32 %v1161_v4, %v1097_v34  ;;  %v1255_v7 = vsel %vm1223_vm4, %v2184_v61, 0.0  ;;  %v1257_v15 = vsel %vm1225_vm5, %v2184_v61, 0.0 }
 0x1d5   : > { %vm480_vm7 = vcmp.eq.s32.totalorder %v2112_v31, %v2163_v14  ;;  %v518_v16 = vsel %vm478_vm6, %v2157_v8, 0.0  ;;  %vm558_vm8 = vcmp.eq.s32.totalorder %v2109_v30, %v2166_v50  ;;  %vm560_vm9 = vcmp.eq.s32.totalorder %v2112_v31, %v2166_v50 }
 0x1d6   : > { %v1287_v21 = vadd.f32 %v1255_v7, %v1191_v26  ;;  %v1289_v24 = vadd.f32 %v1257_v15, %v1193_v27  ;;  %v520_v28 = vsel %vm480_vm7, %v2157_v8, 0.0  ;;  %v598_v32 = vsel %vm558_vm8, %v2160_v11, 0.0 }
 0x1d7   : > { %v600_v36 = vsel %vm560_vm9, %v2160_v11, 0.0  ;;  %v630_v40 = vadd.f32 %v598_v32, %v518_v16  ;;  %vm670_vm10 = vcmp.eq.s32.totalorder %v2109_v30, %v2169_v56  ;;  %vm672_vm11 = vcmp.eq.s32.totalorder %v2112_v31, %v2169_v56 }
 0x1d8   : > { %v1311_v41 = vpack.c.bf16 %v1289_v24, %v1287_v21  ;;  %v632_v22 = vadd.f32 %v600_v36, %v520_v28  ;;  %v710_v23 = vsel %vm670_vm10, %v2151_v2, 0.0  ;;  %v712_v10 = vsel %vm672_vm11, %v2151_v2, 0.0 }
 0x1d9   : > { %v742_v42 = vadd.f32 %v710_v23, %v630_v40  ;;  %vm782_vm12 = vcmp.eq.s32.totalorder %v2109_v30, %v2172_v57  ;;  %vm784_vm13 = vcmp.eq.s32.totalorder %v2112_v31, %v2172_v57  ;;  %vm966_vm14 = vcmp.eq.s32.totalorder %v2139_v46, %v2163_v14 }
 0x1da   : > { %1326 = vmatprep.subr.bf16.mxu0 %v1311_v41  ;;  %v744_v43 = vadd.f32 %v712_v10, %v632_v22  ;;  %v822_v12 = vsel %vm782_vm12, %v2154_v5, 0.0  ;;  %v824_v13 = vsel %vm784_vm13, %v2154_v5, 0.0  ;;  %vm968_vm15 = vcmp.eq.s32.totalorder %v2142_v47, %v2163_v14 }
 0x1db   : > { %v854_v18 = vadd.f32 %v822_v12, %v742_v42  ;;  %v998_v19 = vsel %vm966_vm14, %v2157_v8, 0.0  ;;  %v1000_v30 = vsel %vm968_vm15, %v2157_v8, 0.0  ;;  %vm1030_vm0 = vcmp.eq.s32.totalorder %v2139_v46, %v2166_v50 }
 0x1dc   : > { %v856_v31 = vadd.f32 %v824_v13, %v744_v43  ;;  %vm1032_vm1 = vcmp.eq.s32.totalorder %v2142_v47, %v2166_v50  ;;  %v1062_v45 = vsel %vm1030_vm0, %v2160_v11, 0.0  ;;  %vm1126_vm2 = vcmp.eq.s32.totalorder %v2139_v46, %v2169_v56 }
 0x1dd   : > { %v1064_v48 = vsel %vm1032_vm1, %v2160_v11, 0.0  ;;  %v1094_v49 = vadd.f32 %v1062_v45, %v998_v19  ;;  %vm1128_vm3 = vcmp.eq.s32.totalorder %v2142_v47, %v2169_v56  ;;  %v1158_v58 = vsel %vm1126_vm2, %v2151_v2, 0.0 }
 0x1de   : > { %v878_v59 = vpack.c.bf16 %v856_v31, %v854_v18  ;;  %v1096_v25 = vadd.f32 %v1064_v48, %v1000_v30  ;;  %v1160_v29 = vsel %vm1128_vm3, %v2151_v2, 0.0  ;;  %vm1222_vm4 = vcmp.eq.s32.totalorder %v2139_v46, %v2172_v57 }
 0x1df   : > { %v1190_v62 = vadd.f32 %v1158_v58, %v1094_v49  ;;  %vm1224_vm5 = vcmp.eq.s32.totalorder %v2142_v47, %v2172_v57  ;;  %v1254_v37 = vsel %vm1222_vm4, %v2154_v5, 0.0  ;;  %vm483_vm6 = vcmp.eq.s32.totalorder %v2121_v35, %v2187_v63 }
 0x1e0   : > { %895 = vmatpush1.bf16.msra.mxu1 %v878_v59  ;;  %v1192_v38 = vadd.f32 %v1160_v29, %v1096_v25  ;;  %v1256_v52 = vsel %vm1224_vm5, %v2154_v5, 0.0  ;;  %vm485_vm7 = vcmp.eq.s32.totalorder %v2130_v39, %v2187_v63  ;;  %v523_v53 = vsel %vm483_vm6, %v2175_v60, 0.0 }
 0x1e1   : > { %v1286_v6 = vadd.f32 %v1254_v37, %v1190_v62  ;;  %v525_v46 = vsel %vm485_vm7, %v2175_v60, 0.0  ;;  %vm563_vm8 = vcmp.eq.s32.totalorder %v2121_v35, %v2190_v0  ;;  %vm565_vm9 = vcmp.eq.s32.totalorder %v2130_v39, %v2190_v0 }
 0x1e2   : > { %v1288_v47 = vadd.f32 %v1256_v52, %v1192_v38  ;;  %v603_v20 = vsel %vm563_vm8, %v2178_v44, 0.0  ;;  %v605_v33 = vsel %vm565_vm9, %v2178_v44, 0.0  ;;  %vm675_vm10 = vcmp.eq.s32.totalorder %v2121_v35, %v2197_v1 }
 0x1e3   : > { %v635_v34 = vadd.f32 %v603_v20, %v523_v53  ;;  %v637_v17 = vadd.f32 %v605_v33, %v525_v46  ;;  %vm677_vm11 = vcmp.eq.s32.totalorder %v2130_v39, %v2197_v1  ;;  %v715_v4 = vsel %vm675_vm10, %v2181_v54, 0.0 }
 0x1e4   : > { %v1310_v26 = vpack.c.bf16 %v1288_v47, %v1286_v6  ;;  %v717_v27 = vsel %vm677_vm11, %v2181_v54, 0.0  ;;  %vm787_vm12 = vcmp.eq.s32.totalorder %v2121_v35, %v2200_v3  ;;  %vm789_vm13 = vcmp.eq.s32.totalorder %v2130_v39, %v2200_v3 }
 0x1e5   : > { %v747_v7 = vadd.f32 %v715_v4, %v635_v34  ;;  %v749_v15 = vadd.f32 %v717_v27, %v637_v17  ;;  %v827_v16 = vsel %vm787_vm12, %v2184_v61, 0.0  ;;  %v829_v21 = vsel %vm789_vm13, %v2184_v61, 0.0 }
 0x1e6   : > { %1327 = vmatpush1.bf16.msra.mxu0 %v1310_v26  ;;  %vm971_vm14 = vcmp.eq.s32.totalorder %v2145_v51, %v2187_v63  ;;  %vm973_vm15 = vcmp.eq.s32.totalorder %v2148_v55, %v2187_v63  ;;  %vm1035_vm0 = vcmp.eq.s32.totalorder %v2145_v51, %v2190_v0  ;;  %vm1037_vm1 = vcmp.eq.s32.totalorder %v2148_v55, %v2190_v0 }
 0x1e7   : > { %v859_v24 = vadd.f32 %v827_v16, %v747_v7  ;;  %v861_v28 = vadd.f32 %v829_v21, %v749_v15  ;;  %v1003_v32 = vsel %vm971_vm14, %v2175_v60, 0.0  ;;  %v1005_v36 = vsel %vm973_vm15, %v2175_v60, 0.0 }
 0x1e8   : > { %v1067_v40 = vsel %vm1035_vm0, %v2178_v44, 0.0  ;;  %v1069_v41 = vsel %vm1037_vm1, %v2178_v44, 0.0  ;;  %vm1131_vm2 = vcmp.eq.s32.totalorder %v2145_v51, %v2197_v1  ;;  %vm1133_vm3 = vcmp.eq.s32.totalorder %v2148_v55, %v2197_v1 }
 0x1e9   : > { %v881_v22 = vpack.c.bf16 %v861_v28, %v859_v24  ;;  %v1099_v23 = vadd.f32 %v1067_v40, %v1003_v32  ;;  %v1101_v10 = vadd.f32 %v1069_v41, %v1005_v36  ;;  %v1163_v42 = vsel %vm1131_vm2, %v2181_v54, 0.0 }
 0x1ea   : > { %v1165_v43 = vsel %vm1133_vm3, %v2181_v54, 0.0  ;;  %vm1227_vm4 = vcmp.eq.s32.totalorder %v2145_v51, %v2200_v3  ;;  %vm1229_vm5 = vcmp.eq.s32.totalorder %v2148_v55, %v2200_v3  ;;  %vm482_vm6 = vcmp.eq.s32.totalorder %v2121_v35, %v2163_v14 }
 0x1eb   : > { %896 = vmatprep.subr.bf16.mxu1 %v881_v22  ;;  %v1195_v12 = vadd.f32 %v1163_v42, %v1099_v23  ;;  %v1197_v13 = vadd.f32 %v1165_v43, %v1101_v10  ;;  %v1259_v18 = vsel %vm1227_vm4, %v2184_v61, 0.0  ;;  %v1261_v19 = vsel %vm1229_vm5, %v2184_v61, 0.0 }
 0x1ec   : > { %vm484_vm7 = vcmp.eq.s32.totalorder %v2130_v39, %v2163_v14  ;;  %v522_v30 = vsel %vm482_vm6, %v2157_v8, 0.0  ;;  %vm562_vm8 = vcmp.eq.s32.totalorder %v2121_v35, %v2166_v50  ;;  %vm564_vm9 = vcmp.eq.s32.totalorder %v2130_v39, %v2166_v50 }
 0x1ed   : > { %v1291_v31 = vadd.f32 %v1259_v18, %v1195_v12  ;;  %v1293_v45 = vadd.f32 %v1261_v19, %v1197_v13  ;;  %v524_v48 = vsel %vm484_vm7, %v2157_v8, 0.0  ;;  %v602_v49 = vsel %vm562_vm8, %v2160_v11, 0.0 }
 0x1ee   : > { %v604_v58 = vsel %vm564_vm9, %v2160_v11, 0.0  ;;  %v634_v59 = vadd.f32 %v602_v49, %v522_v30  ;;  %vm674_vm10 = vcmp.eq.s32.totalorder %v2121_v35, %v2169_v56  ;;  %vm676_vm11 = vcmp.eq.s32.totalorder %v2130_v39, %v2169_v56 }
 0x1ef   : > { %v1313_v25 = vpack.c.bf16 %v1293_v45, %v1291_v31  ;;  %v636_v29 = vadd.f32 %v604_v58, %v524_v48  ;;  %v714_v62 = vsel %vm674_vm10, %v2151_v2, 0.0  ;;  %v716_v37 = vsel %vm676_vm11, %v2151_v2, 0.0 }
 0x1f0   : > { %v746_v38 = vadd.f32 %v714_v62, %v634_v59  ;;  %vm786_vm12 = vcmp.eq.s32.totalorder %v2121_v35, %v2172_v57  ;;  %vm788_vm13 = vcmp.eq.s32.totalorder %v2130_v39, %v2172_v57  ;;  %vm970_vm14 = vcmp.eq.s32.totalorder %v2145_v51, %v2163_v14 }
 0x1f1   : > { %1328 = vmatprep.subr.bf16.mxu0 %v1313_v25  ;;  %v748_v52 = vadd.f32 %v716_v37, %v636_v29  ;;  %v826_v53 = vsel %vm786_vm12, %v2154_v5, 0.0  ;;  %v828_v6 = vsel %vm788_vm13, %v2154_v5, 0.0  ;;  %vm972_vm15 = vcmp.eq.s32.totalorder %v2148_v55, %v2163_v14 }
 0x1f2   : > { %v858_v46 = vadd.f32 %v826_v53, %v746_v38  ;;  %v1002_v47 = vsel %vm970_vm14, %v2157_v8, 0.0  ;;  %v1004_v35 = vsel %vm972_vm15, %v2157_v8, 0.0  ;;  %vm1034_vm0 = vcmp.eq.s32.totalorder %v2145_v51, %v2166_v50 }
 0x1f3   : > { %v860_v39 = vadd.f32 %v828_v6, %v748_v52  ;;  %vm1036_vm1 = vcmp.eq.s32.totalorder %v2148_v55, %v2166_v50  ;;  %v1066_v20 = vsel %vm1034_vm0, %v2160_v11, 0.0  ;;  %vm1130_vm2 = vcmp.eq.s32.totalorder %v2145_v51, %v2169_v56 }
 0x1f4   : > { %v1068_v33 = vsel %vm1036_vm1, %v2160_v11, 0.0  ;;  %v1098_v34 = vadd.f32 %v1066_v20, %v1002_v47  ;;  %vm1132_vm3 = vcmp.eq.s32.totalorder %v2148_v55, %v2169_v56  ;;  %v1162_v17 = vsel %vm1130_vm2, %v2151_v2, 0.0 }
 0x1f5   : > { %v880_v4 = vpack.c.bf16 %v860_v39, %v858_v46  ;;  %v1100_v26 = vadd.f32 %v1068_v33, %v1004_v35  ;;  %v1164_v27 = vsel %vm1132_vm3, %v2151_v2, 0.0  ;;  %vm1226_vm4 = vcmp.eq.s32.totalorder %v2145_v51, %v2172_v57 }
 0x1f6   : > { %v1194_v7 = vadd.f32 %v1162_v17, %v1098_v34  ;;  %vm1228_vm5 = vcmp.eq.s32.totalorder %v2148_v55, %v2172_v57  ;;  %v1258_v15 = vsel %vm1226_vm4, %v2154_v5, 0.0  ;;  %v2781_v16 = vadd.s32 96, %v2065_v9 }
 0x1f7   : > { %897 = vmatpush1.bf16.msra.mxu1 %v880_v4  ;;  %v1196_v21 = vadd.f32 %v1164_v27, %v1100_v26  ;;  %v1260_v24 = vsel %vm1228_vm5, %v2154_v5, 0.0  ;;  %v2785_v28 = vadd.s32 104, %v2065_v9  ;;  %v2788_v32 = vadd.s32 112, %v2065_v9 }
 0x1f8   : > { %v1290_v51 = vadd.f32 %v1258_v15, %v1194_v7  ;;  %vm487_vm6 = vcmp.eq.s32.totalorder %v2781_v16, %v2187_v63  ;;  %vm567_vm7 = vcmp.eq.s32.totalorder %v2781_v16, %v2190_v0  ;;  %vm679_vm8 = vcmp.eq.s32.totalorder %v2781_v16, %v2197_v1 }
 0x1f9   : > { %v1292_v55 = vadd.f32 %v1260_v24, %v1196_v21  ;;  %vm489_vm9 = vcmp.eq.s32.totalorder %v2785_v28, %v2187_v63  ;;  %v527_v36 = vsel %vm487_vm6, %v2175_v60, 0.0  ;;  %vm569_vm10 = vcmp.eq.s32.totalorder %v2785_v28, %v2190_v0 }
 0x1fa   : > { %v529_v40 = vsel %vm489_vm9, %v2175_v60, 0.0  ;;  %v607_v41 = vsel %vm567_vm7, %v2178_v44, 0.0  ;;  %v609_v22 = vsel %vm569_vm10, %v2178_v44, 0.0  ;;  %vm681_vm11 = vcmp.eq.s32.totalorder %v2785_v28, %v2197_v1 }
 0x1fb   : > { %v1312_v23 = vpack.c.bf16 %v1292_v55, %v1290_v51  ;;  %v639_v10 = vadd.f32 %v607_v41, %v527_v36  ;;  %v641_v42 = vadd.f32 %v609_v22, %v529_v40  ;;  %v719_v43 = vsel %vm679_vm8, %v2181_v54, 0.0 }
 0x1fc   : > { %v721_v12 = vsel %vm681_vm11, %v2181_v54, 0.0  ;;  %vm791_vm12 = vcmp.eq.s32.totalorder %v2781_v16, %v2200_v3  ;;  %vm793_vm13 = vcmp.eq.s32.totalorder %v2785_v28, %v2200_v3  ;;  %v2813_v13 = vadd.s32 128, %v2781_v16 }
 0x1fd   : > { %1329 = vmatpush1.bf16.msra.mxu0 %v1312_v23  ;;  %v751_v18 = vadd.f32 %v719_v43, %v639_v10  ;;  %v753_v19 = vadd.f32 %v721_v12, %v641_v42  ;;  %v831_v30 = vsel %vm791_vm12, %v2184_v61, 0.0  ;;  %v833_v31 = vsel %vm793_vm13, %v2184_v61, 0.0 }
 0x1fe   : > { %v2818_v45 = vadd.s32 128, %v2785_v28  ;;  %vm975_vm14 = vcmp.eq.s32.totalorder %v2813_v13, %v2187_v63  ;;  %vm1039_vm15 = vcmp.eq.s32.totalorder %v2813_v13, %v2190_v0  ;;  %vm1135_vm0 = vcmp.eq.s32.totalorder %v2813_v13, %v2197_v1 }
 0x1ff   : > { %v863_v48 = vadd.f32 %v831_v30, %v751_v18  ;;  %v865_v49 = vadd.f32 %v833_v31, %v753_v19  ;;  %v1007_v58 = vsel %vm975_vm14, %v2175_v60, 0.0  ;;  %v1071_v59 = vsel %vm1039_vm15, %v2178_v44, 0.0 }
 0x200   : > { %vm977_vm1 = vcmp.eq.s32.totalorder %v2818_v45, %v2187_v63  ;;  %vm1041_vm2 = vcmp.eq.s32.totalorder %v2818_v45, %v2190_v0  ;;  %v1103_v25 = vadd.f32 %v1071_v59, %v1007_v58  ;;  %vm1137_vm3 = vcmp.eq.s32.totalorder %v2818_v45, %v2197_v1 }
 0x201   : > { %v883_v29 = vpack.c.bf16 %v865_v49, %v863_v48  ;;  %v1009_v62 = vsel %vm977_vm1, %v2175_v60, 0.0  ;;  %v1073_v37 = vsel %vm1041_vm2, %v2178_v44, 0.0  ;;  %v1167_v38 = vsel %vm1135_vm0, %v2181_v54, 0.0 }
 0x202   : > { %v1105_v52 = vadd.f32 %v1073_v37, %v1009_v62  ;;  %v1169_v53 = vsel %vm1137_vm3, %v2181_v54, 0.0  ;;  %v1199_v6 = vadd.f32 %v1167_v38, %v1103_v25  ;;  %vm1231_vm4 = vcmp.eq.s32.totalorder %v2813_v13, %v2200_v3 }
 0x203   : > { %898 = vmatprep.subr.bf16.mxu1 %v883_v29  ;;  %vm1233_vm5 = vcmp.eq.s32.totalorder %v2818_v45, %v2200_v3  ;;  %v1263_v46 = vsel %vm1231_vm4, %v2184_v61, 0.0  ;;  %vm486_vm6 = vcmp.eq.s32.totalorder %v2781_v16, %v2163_v14  ;;  %vm488_vm7 = vcmp.eq.s32.totalorder %v2785_v28, %v2163_v14 }
 0x204   : > { %v1201_v47 = vadd.f32 %v1169_v53, %v1105_v52  ;;  %v1265_v35 = vsel %vm1233_vm5, %v2184_v61, 0.0  ;;  %v1295_v39 = vadd.f32 %v1263_v46, %v1199_v6  ;;  %v526_v20 = vsel %vm486_vm6, %v2157_v8, 0.0 }
 0x205   : > { %v528_v33 = vsel %vm488_vm7, %v2157_v8, 0.0  ;;  %vm566_vm8 = vcmp.eq.s32.totalorder %v2781_v16, %v2166_v50  ;;  %vm568_vm9 = vcmp.eq.s32.totalorder %v2785_v28, %v2166_v50  ;;  %vm678_vm10 = vcmp.eq.s32.totalorder %v2781_v16, %v2169_v56 }
 0x206   : > { %v1297_v34 = vadd.f32 %v1265_v35, %v1201_v47  ;;  %v606_v17 = vsel %vm566_vm8, %v2160_v11, 0.0  ;;  %v608_v4 = vsel %vm568_vm9, %v2160_v11, 0.0  ;;  %vm680_vm11 = vcmp.eq.s32.totalorder %v2785_v28, %v2169_v56 }
 0x207   : > { %v638_v26 = vadd.f32 %v606_v17, %v526_v20  ;;  %v640_v27 = vadd.f32 %v608_v4, %v528_v33  ;;  %v718_v7 = vsel %vm678_vm10, %v2151_v2, 0.0  ;;  %v720_v15 = vsel %vm680_vm11, %v2151_v2, 0.0 }
 0x208   : > { %v1315_v21 = vpack.c.bf16 %v1297_v34, %v1295_v39  ;;  %vm790_vm12 = vcmp.eq.s32.totalorder %v2781_v16, %v2172_v57  ;;  %vm792_vm13 = vcmp.eq.s32.totalorder %v2785_v28, %v2172_v57  ;;  %vm974_vm14 = vcmp.eq.s32.totalorder %v2813_v13, %v2163_v14 }
 0x209   : > { %v750_v24 = vadd.f32 %v718_v7, %v638_v26  ;;  %v752_v51 = vadd.f32 %v720_v15, %v640_v27  ;;  %v830_v55 = vsel %vm790_vm12, %v2154_v5, 0.0  ;;  %v832_v36 = vsel %vm792_vm13, %v2154_v5, 0.0 }
 0x20a   : > { %1330 = vmatprep.subr.bf16.mxu0 %v1315_v21  ;;  %vm976_vm15 = vcmp.eq.s32.totalorder %v2818_v45, %v2163_v14  ;;  %v1006_v40 = vsel %vm974_vm14, %v2157_v8, 0.0  ;;  %vm1038_vm0 = vcmp.eq.s32.totalorder %v2813_v13, %v2166_v50  ;;  %vm1040_vm1 = vcmp.eq.s32.totalorder %v2818_v45, %v2166_v50 }
 0x20b   : > { %v862_v16 = vadd.f32 %v830_v55, %v750_v24  ;;  %v864_v28 = vadd.f32 %v832_v36, %v752_v51  ;;  %v1008_v41 = vsel %vm976_vm15, %v2157_v8, 0.0  ;;  %v1070_v22 = vsel %vm1038_vm0, %v2160_v11, 0.0 }
 0x20c   : > { %v1072_v23 = vsel %vm1040_vm1, %v2160_v11, 0.0  ;;  %v1102_v10 = vadd.f32 %v1070_v22, %v1006_v40  ;;  %vm1134_vm2 = vcmp.eq.s32.totalorder %v2813_v13, %v2169_v56  ;;  %vm1136_vm3 = vcmp.eq.s32.totalorder %v2818_v45, %v2169_v56 }
 0x20d   : > { %v882_v42 = vpack.c.bf16 %v864_v28, %v862_v16  ;;  %v1104_v43 = vadd.f32 %v1072_v23, %v1008_v41  ;;  %v1166_v12 = vsel %vm1134_vm2, %v2151_v2, 0.0  ;;  %v1168_v18 = vsel %vm1136_vm3, %v2151_v2, 0.0 }
 0x20e   : > { %v1198_v19 = vadd.f32 %v1166_v12, %v1102_v10  ;;  %vm1230_vm4 = vcmp.eq.s32.totalorder %v2813_v13, %v2172_v57  ;;  %vm1232_vm5 = vcmp.eq.s32.totalorder %v2818_v45, %v2172_v57  ;;  %v2891_v30 = vadd.s32 120, %v2065_v9 }
 0x20f   : > { %899 = vmatpush1.bf16.msra.mxu1 %v882_v42  ;;  %v1200_v31 = vadd.f32 %v1168_v18, %v1104_v43  ;;  %v1262_v48 = vsel %vm1230_vm4, %v2154_v5, 0.0  ;;  %v1264_v49 = vsel %vm1232_vm5, %v2154_v5, 0.0  ;;  %vm491_vm6 = vcmp.eq.s32.totalorder %v2788_v32, %v2187_v63 }
 0x210   : > { %v1294_v58 = vadd.f32 %v1262_v48, %v1198_v19  ;;  %vm493_vm7 = vcmp.eq.s32.totalorder %v2891_v30, %v2187_v63  ;;  %v531_v13 = vsel %vm491_vm6, %v2175_v60, 0.0  ;;  %vm571_vm8 = vcmp.eq.s32.totalorder %v2788_v32, %v2190_v0 }
 0x211   : > { %v1296_v9 = vadd.f32 %v1264_v49, %v1200_v31  ;;  %v533_v45 = vsel %vm493_vm7, %v2175_v60, 0.0  ;;  %vm573_vm9 = vcmp.eq.s32.totalorder %v2891_v30, %v2190_v0  ;;  %v611_v59 = vsel %vm571_vm8, %v2178_v44, 0.0 }
 0x212   : > { %v613_v25 = vsel %vm573_vm9, %v2178_v44, 0.0  ;;  %v643_v29 = vadd.f32 %v611_v59, %v531_v13  ;;  %vm683_vm10 = vcmp.eq.s32.totalorder %v2788_v32, %v2197_v1  ;;  %vm685_vm11 = vcmp.eq.s32.totalorder %v2891_v30, %v2197_v1 }
 0x213   : > { %v1314_v62 = vpack.c.bf16 %v1296_v9, %v1294_v58  ;;  %v645_v37 = vadd.f32 %v613_v25, %v533_v45  ;;  %v723_v38 = vsel %vm683_vm10, %v2181_v54, 0.0  ;;  %v725_v52 = vsel %vm685_vm11, %v2181_v54, 0.0 }
 0x214   : > { %v755_v53 = vadd.f32 %v723_v38, %v643_v29  ;;  %vm795_vm12 = vcmp.eq.s32.totalorder %v2788_v32, %v2200_v3  ;;  %vm797_vm13 = vcmp.eq.s32.totalorder %v2891_v30, %v2200_v3  ;;  %v2918_v6 = vadd.s32 128, %v2788_v32 }
 0x215   : > { %1331 = vmatpush1.bf16.msra.mxu0 %v1314_v62  ;;  %v757_v46 = vadd.f32 %v725_v52, %v645_v37  ;;  %v835_v47 = vsel %vm795_vm12, %v2184_v61, 0.0  ;;  %v837_v35 = vsel %vm797_vm13, %v2184_v61, 0.0  ;;  %v2923_v39 = vadd.s32 128, %v2891_v30 }
 0x216   : > { %v867_v20 = vadd.f32 %v835_v47, %v755_v53  ;;  %vm979_vm14 = vcmp.eq.s32.totalorder %v2918_v6, %v2187_v63  ;;  %vm1043_vm15 = vcmp.eq.s32.totalorder %v2918_v6, %v2190_v0  ;;  %vm1139_vm0 = vcmp.eq.s32.totalorder %v2918_v6, %v2197_v1 }
 0x217   : > { %v869_v33 = vadd.f32 %v837_v35, %v757_v46  ;;  %vm981_vm1 = vcmp.eq.s32.totalorder %v2923_v39, %v2187_v63  ;;  %v1011_v34 = vsel %vm979_vm14, %v2175_v60, 0.0  ;;  %vm1045_vm2 = vcmp.eq.s32.totalorder %v2923_v39, %v2190_v0 }
 0x218   : > { %v1013_v17 = vsel %vm981_vm1, %v2175_v60, 0.0  ;;  %v1075_v4 = vsel %vm1043_vm15, %v2178_v44, 0.0  ;;  %v1077_v26 = vsel %vm1045_vm2, %v2178_v44, 0.0  ;;  %vm1141_vm3 = vcmp.eq.s32.totalorder %v2923_v39, %v2197_v1 }
 0x219   : > { %v885_v27 = vpack.c.bf16 %v869_v33, %v867_v20  ;;  %v1107_v7 = vadd.f32 %v1075_v4, %v1011_v34  ;;  %v1109_v15 = vadd.f32 %v1077_v26, %v1013_v17  ;;  %v1171_v21 = vsel %vm1139_vm0, %v2181_v54, 0.0 }
 0x21a   : > { %v1173_v63 = vsel %vm1141_vm3, %v2181_v54, 0.0  ;;  %vm1235_vm4 = vcmp.eq.s32.totalorder %v2918_v6, %v2200_v3  ;;  %vm1237_vm5 = vcmp.eq.s32.totalorder %v2923_v39, %v2200_v3  ;;  %vm490_vm6 = vcmp.eq.s32.totalorder %v2788_v32, %v2163_v14 }
 0x21b   : > { %900 = vmatprep.subr.bf16.mxu1 %v885_v27  ;;  %v1203_v60 = vadd.f32 %v1171_v21, %v1107_v7  ;;  %v1205_v44 = vadd.f32 %v1173_v63, %v1109_v15  ;;  %v1267_v0 = vsel %vm1235_vm4, %v2184_v61, 0.0  ;;  %v1269_v1 = vsel %vm1237_vm5, %v2184_v61, 0.0 }
 0x21c   : > { %vm492_vm7 = vcmp.eq.s32.totalorder %v2891_v30, %v2163_v14  ;;  %v530_v54 = vsel %vm490_vm6, %v2157_v8, 0.0  ;;  %vm570_vm8 = vcmp.eq.s32.totalorder %v2788_v32, %v2166_v50  ;;  %vm572_vm9 = vcmp.eq.s32.totalorder %v2891_v30, %v2166_v50 }
 0x21d   : > { %v1299_v3 = vadd.f32 %v1267_v0, %v1203_v60  ;;  %v1301_v24 = vadd.f32 %v1269_v1, %v1205_v44  ;;  %v532_v51 = vsel %vm492_vm7, %v2157_v8, 0.0  ;;  %v610_v55 = vsel %vm570_vm8, %v2160_v11, 0.0 }
 0x21e   : > { %v612_v36 = vsel %vm572_vm9, %v2160_v11, 0.0  ;;  %v642_v61 = vadd.f32 %v610_v55, %v530_v54  ;;  %vm682_vm10 = vcmp.eq.s32.totalorder %v2788_v32, %v2169_v56  ;;  %vm684_vm11 = vcmp.eq.s32.totalorder %v2891_v30, %v2169_v56 }
 0x21f   : > { %v1317_v40 = vpack.c.bf16 %v1301_v24, %v1299_v3  ;;  %v644_v16 = vadd.f32 %v612_v36, %v532_v51  ;;  %v722_v28 = vsel %vm682_vm10, %v2151_v2, 0.0  ;;  %v724_v41 = vsel %vm684_vm11, %v2151_v2, 0.0 }
 0x220   : > { %v754_v22 = vadd.f32 %v722_v28, %v642_v61  ;;  %vm794_vm12 = vcmp.eq.s32.totalorder %v2788_v32, %v2172_v57  ;;  %vm796_vm13 = vcmp.eq.s32.totalorder %v2891_v30, %v2172_v57  ;;  %vm978_vm14 = vcmp.eq.s32.totalorder %v2918_v6, %v2163_v14 }
 0x221   : > { %1332 = vmatprep.subr.bf16.mxu0 %v1317_v40  ;;  %v756_v23 = vadd.f32 %v724_v41, %v644_v16  ;;  %v834_v10 = vsel %vm794_vm12, %v2154_v5, 0.0  ;;  %vm980_vm15 = vcmp.eq.s32.totalorder %v2923_v39, %v2163_v14  ;;  %v836_v42 = vsel %vm796_vm13, %v2154_v5, 0.0 }
 0x222   : > { %v866_v43 = vadd.f32 %v834_v10, %v754_v22  ;;  %v1010_v12 = vsel %vm978_vm14, %v2157_v8, 0.0  ;;  %vm1042_vm0 = vcmp.eq.s32.totalorder %v2918_v6, %v2166_v50  ;;  %vm1044_vm1 = vcmp.eq.s32.totalorder %v2923_v39, %v2166_v50  ;;  %v430_v50 = vld [vmem:[%s239_s14] sm:$0xff] }
 0x223   : > { %v868_v32 = vadd.f32 %v836_v42, %v756_v23  ;;  %v1074_v18 = vsel %vm1042_vm0, %v2160_v11, 0.0  ;;  %vm1138_vm2 = vcmp.eq.s32.totalorder %v2918_v6, %v2169_v56  ;;  %v1012_v14 = vsel %vm980_vm15, %v2157_v8, 0.0 }
 0x224   : > { %v1076_v19 = vsel %vm1044_vm1, %v2160_v11, 0.0  ;;  %v1106_v30 = vadd.f32 %v1074_v18, %v1010_v12  ;;  %vm1140_vm3 = vcmp.eq.s32.totalorder %v2923_v39, %v2169_v56  ;;  %v1170_v49 = vsel %vm1138_vm2, %v2151_v2, 0.0 }
 0x225   : > { %v884_v31 = vpack.c.bf16 %v868_v32, %v866_v43  ;;  %v1108_v48 = vadd.f32 %v1076_v19, %v1012_v14  ;;  %vm1234_vm4 = vcmp.eq.s32.totalorder %v2918_v6, %v2172_v57  ;;  %v1172_v58 = vsel %vm1140_vm3, %v2151_v2, 0.0 }
 0x226   : > { %v1202_v13 = vadd.f32 %v1170_v49, %v1106_v30  ;;  %vm1236_vm5 = vcmp.eq.s32.totalorder %v2923_v39, %v2172_v57  ;;  %v1266_v11 = vsel %vm1234_vm4, %v2154_v5, 0.0  ;;  %v1846_v56 = vmov 0  }
 0x227   : > { %901 = vmatpush1.bf16.msra.mxu1 %v884_v31  ;;  %v1204_v8 = vadd.f32 %v1172_v58, %v1108_v48  ;;  %918 = vmatprep.mubr.bf16.mxu1 %v1846_v56  ;;  %v434_v9 = vpack.c.bf16 %v430_v50, %v430_v50  ;;  %v1268_v45 = vsel %vm1236_vm5, %v2154_v5, 0.0  ;;  %v432_v25 = vcombine.high %v430_v50, %v430_v50 }
 0x228   : > { %v1298_v59 = vadd.f32 %v1266_v11, %v1202_v13  ;;  %1350 = vmatprep.mubr.bf16.mxu0 %v1846_v56 }
 0x229   : > { %v1300_v2 = vadd.f32 %v1268_v45, %v1204_v8  ;;  %v435_v57 = vpack.c.bf16 %v432_v25, %v432_v25 }
 0x22a   : > { %919 = vmatmul.mubr.bf16.vlgmr.msra.gmra.mrb[0].mxu1 %v434_v9 }
 0x22b   : > { %v1316_v29 = vpack.c.bf16 %v1300_v2, %v1298_v59 }
 0x22d   : > { %1333 = vmatpush1.bf16.msra.mxu0 %v1316_v29 }
 0x230   : > { %1351 = vmatmul.mubr.bf16.vlgmr.msra.gmra.mrb[4].mxu0 %v435_v57 }
 0x231   : > { %1748 = shalt.err (!%p1745_p7)
}
 0x232   : > { %s1749_s6 = scalar_lea.hbm %s3005_s7, 64  ;;  %s1753_s8 = scalar_lea.hbm %s3079_s4, 128 }
 0x233   : > { %p1750_p9 = scmp.ne.s32.totalorder %s3005_s7, %s1749_s6  ;;  %p1754_p3 = scmp.lt.u32.totalorder %s3005_s7, %s3079_s4 }
 0x234   : > { %p1755_p1 = scmp.lt.u32.totalorder %s1753_s8, %s1749_s6  ;;  %p1757_p2 = scmp.lt.u32.totalorder %s1749_s6, %s3005_s7 }
 0x235   : > { %p1751_p12 = pnand %p1750_p9, %p3102_p4 }
 0x236   : > { %p1756_p10 = por %p1755_p1, %p1754_p3 }
 0x237   : > { %p1752_p6 = pneg %p1751_p12 }
 0x238   : > { %p1758_p0 = por %p1757_p2, %p1756_p10 }
 0x23a   : > { %p1759_p11 = pnand %p1758_p0, %p1752_p6 }
 0x23c   : > { %1762 = shalt.err (!%p1759_p11)
}
 0x23d   : > { %1583 = dma.vmem_to_hbm [thread:$0]  (%p3102_p4), %s1401_s5, 64, %s3005_s7, %s1372_s9  }
 0x23e   : > { %s1562_s21 = sshll.u32 %s1956_s25, 7  ;;  %s266_s12 = scalar_lea.vmem [#allocation8], %s1546_s30 }
 0x23f   : > { %s1386_s13 = sshll.u32 %s266_s12, 4  ;;  %s3031_s5 = scalar_lea.hbm %s3078_s3, %s1562_s21  ;;  %s3033_s13 = int_to_ptr.vmem [resolvable:$true] %s1386_s13 }
 0x240   : > { %s1367_s7 = scalar_lea.sflag [#allocation4], %s2058_s23  ;;  %s1763_s25 = scalar_lea.vmem %s3033_s13, 128 }
 0x241   : > { %p1764_p13 = scmp.ne.s32.totalorder %s3033_s13, %s1763_s25  ;;  %s1848_s30 = smov [#allocation8]  }
 0x242   : > { %s1767_s9 = sshll.u32 %s1848_s30, 4  ;;  %s1768_s9 = int_to_ptr.vmem [resolvable:$false] %s1767_s9 }
 0x243   : > { %p1765_p8 = pnand %p1764_p13, %p3102_p4  ;;  %s1769_s10 = scalar_lea.vmem %s1768_s9, 256 }
 0x244   : > { %p1770_p7 = scmp.lt.s32.totalorder %s3033_s13, %s1768_s9  ;;  %p1771_p9 = scmp.lt.s32.totalorder %s1769_s10, %s1763_s25 }
 0x245   : > { %p1766_p5 = pneg %p1765_p8 }
 0x246   : > { %p1772_p12 = por %p1771_p9, %p1770_p7 }
 0x248   : > { %p1773_p6 = pnand %p1772_p12, %p1766_p5 }
 0x2fd   : > { %v920_v5 = vpop.f32.mrb[0].mxu1 }
 0x2fe   : > { %v922_v62 = vpop.f32.mrb[1].mxu1 }
 0x2ff   : > { %v930_v37 = vcombine.low %v920_v5, %v922_v62  ;;  %v924_v38 = vpop.f32.mrb[2].mxu1 }
 0x300   : > { %v925_v52 = vpop.f32.mrb[3].mxu1 }
 0x303   : > { %v1352_v53 = vpop.f32.mrb[4].mxu0 }
 0x304   : > { %v1354_v6 = vpop.f32.mrb[5].mxu0 }
 0x305   : > { %v1362_v46 = vcombine.low %v1352_v53, %v1354_v6  ;;  %v1356_v47 = vpop.f32.mrb[6].mxu0 }
 0x306   : > { %v1357_v35 = vpop.f32.mrb[7].mxu0 }
 0x307   : > { %v1364_v39 = vadd.f32 %v1362_v46, %v930_v37 }
 0x309   : > { %1365 = vst [vmem:[%s266_s12] sm:$0xff] %v1364_v39 }
 0x30a   : > { %1776 = shalt.err (!%p1773_p6)
}
 0x30b   : > { %s1777_s23 = scalar_lea.hbm %s3031_s5, 128  ;;  %s1781_s24 = scalar_lea.hbm %s3078_s3, 256 }
 0x30c   : > { %p1778_p3 = scmp.ne.s32.totalorder %s3031_s5, %s1777_s23  ;;  %p1782_p2 = scmp.lt.u32.totalorder %s3031_s5, %s3078_s3 }
 0x30d   : > { %p1783_p0 = scmp.lt.u32.totalorder %s1781_s24, %s1777_s23  ;;  %p1785_p13 = scmp.lt.u32.totalorder %s1777_s23, %s3031_s5 }
 0x30e   : > { %p1779_p1 = pnand %p1778_p3, %p3102_p4 }
 0x30f   : > { %p1784_p11 = por %p1783_p0, %p1782_p2 }
 0x310   : > { %p1780_p10 = pneg %p1779_p1 }
 0x311   : > { %p1786_p8 = por %p1785_p13, %p1784_p11 }
 0x313   : > { %p1787_p5 = pnand %p1786_p8, %p1780_p10 }
 0x315   : > { %1790 = shalt.err (!%p1787_p5)
}
 0x316   : > { %1582 = dma.vmem_to_hbm [thread:$0]  (%p3102_p4), %s3033_s13, 128, %s3031_s5, %s1367_s7  }
 0x317 PF: > { %s1412_s27 = sand.u32 1, %s1825_s15   ;;  %p3103_p7 = scmp.ne.s32.totalorder %s3092_s29, 0 }
 0x318   : > { %p3104_p9 = scmp.ge.s32.totalorder %s1837_s18, 2  ;;  %s1413_s14 = scalar_lea.sflag [#allocation4], %s1412_s27 }
 0x31a   : > { %p1598_p12 = pnand %p3104_p9, %p3103_p7 }
 0x31c   : > { %1816 = dma.done.wait (!%p1598_p12), %s1413_s14, 128  }
 0x31d   : > { %1818 = vsyncadd (!%p1598_p12), %s1413_s14, 4294967168  ;;  %s1422_s21 = scalar_lea.sflag [#allocation10], %s1412_s27 }
 0x31e   : > { %1820 = dma.done.wait (!%p1598_p12), %s1422_s21, 64  }
 0x31f   : > { %1822 = vsyncadd (!%p1598_p12), %s1422_s21, 4294967232  ;;  %p22_p4 = scmp.ge.s32.totalorder %s1895_s19, 4   ;;  %s3105_s15 = smov %s1829_s16 }
 0x320   : > { %s3106_s16 = smov %s1833_s17  ;;  %s3107_s17 = smov %s1906_s22 }
 0x321   : > { %s3108_s18 = smov %s1895_s19  ;;  %24 = sbr.rel (!%p22_p4) target bundleno = 10 (0xa), region = 110 }
 0x328   :  { %1427 = vsyncpa [#allocation3], 1 }
 0x329   :  { %1429 = vsyncpa [#allocation3 + $0x1], 1 }
 0x32a   :  { %1430 = vsyncpa [#allocation6], 1 }
 0x32b   :  { %1432 = vsyncpa [#allocation6 + $0x1], 1 }
 0x32c   :  { %1433 = vsyncpa [#allocation4], 1 }
 0x32d   :  { %1435 = vsyncpa [#allocation4 + $0x1], 1 }
 0x32e   :  { %1436 = vsyncpa [#allocation10], 1 }
 0x32f   :  { %1438 = vsyncpa [#allocation10 + $0x1], 1 }

</bundles_post_ra>
